<compile_context>
chip_gen: v7x
topology: tpu7x:2x2x1
jax: 0.10.0
libtpu: 0.0.40
codegen_flags: <defaults>
</compile_context>

<pallas_src>
import jax
import jax.numpy as jnp
from jax.experimental import pallas as pl
from jax.experimental.pallas import tpu as pltpu


def _round_up(x, m):
    return ((x + m - 1) // m) * m


def discriminator_kernel(x_ref, w1_ref, b1_ref, w2_ref, b2_ref, w3_ref, b3_ref,
                         out_ref):
    """One (TM, D) batch tile of the MLP forward.

    x_ref  : (TM, D)    bf16 flattened image tile
    w1_ref : (D, 512)   bf16      b1_ref : (1, 512) f32
    w2_ref : (512, 256) bf16      b2_ref : (1, 256) f32
    w3_ref : (1, 256)   f32 (last Linear's weight as a row)
    b3_ref : (1, 1)     f32 scalar in SMEM
    out_ref: (TM, 1)    f32 validity scores
    """
    x = x_ref[...]

    # Linear(D, 512) on the MXU (bf16 in, f32 accumulate) + bias + LeakyReLU(0.2)
    h1 = jnp.dot(x, w1_ref[...], preferred_element_type=jnp.float32)
    h1 = h1 + b1_ref[...]
    h1 = jnp.where(h1 > 0, h1, 0.2 * h1)

    # Linear(512, 256) + LeakyReLU(0.2)
    h2 = jnp.dot(h1.astype(jnp.bfloat16), w2_ref[...],
                 preferred_element_type=jnp.float32)
    h2 = h2 + b2_ref[...]
    h2 = jnp.where(h2 > 0, h2, 0.2 * h2)

    # Linear(256, 1): lane reduction (VPU/XLU) instead of a degenerate MXU matmul.
    validity = jnp.sum(h2 * w3_ref[...], axis=-1, keepdims=True) + b3_ref[0, 0]
    out_ref[...] = validity.astype(out_ref.dtype)


def discriminator_forward(img, params, *, tile_m=128):
    """img: (B, C, H, W) float32  ->  (B, 1) float32 validity."""
    w1, b1, w2, b2, w3, b3 = params
    B = img.shape[0]
    D = w1.shape[0]

    # Flatten exactly like torch .view(B, -1) (row-major) and cast to bf16 for the MXU.
    x_flat = img.reshape(B, -1).astype(jnp.bfloat16)
    assert x_flat.shape[1] == D, (x_flat.shape, D)

    # Tile the batch: at least 16 rows (bf16 sublane packing), at most `tile_m`.
    tm = min(tile_m, _round_up(B, 16))
    b_pad = _round_up(B, tm)
    if b_pad != B:
        x_flat = jnp.pad(x_flat, ((0, b_pad - B), (0, 0)))
    grid = (b_pad // tm,)

    flops = 2 * b_pad * (D * 512 + 512 * 256 + 256)
    bytes_accessed = (
        x_flat.size * 2            # bf16 activations in
        + b_pad * 1 * 4            # f32 validity out
        + w1.size * 2 + w2.size * 2
        + (b1.size + b2.size + w3.size + b3.size) * 4
    )

    out_pad = pl.pallas_call(
        discriminator_kernel,
        out_shape=jax.ShapeDtypeStruct((b_pad, 1), jnp.float32),
        grid=grid,
        in_specs=[
            pl.BlockSpec((tm, D), lambda i: (i, 0)),        # x tile
            pl.BlockSpec((D, 512), lambda i: (0, 0)),       # w1 (resident)
            pl.BlockSpec((1, 512), lambda i: (0, 0)),       # b1
            pl.BlockSpec((512, 256), lambda i: (0, 0)),     # w2 (resident)
            pl.BlockSpec((1, 256), lambda i: (0, 0)),       # b2
            pl.BlockSpec((1, 256), lambda i: (0, 0)),       # w3 row
            pl.BlockSpec(memory_space=pltpu.MemorySpace.SMEM),  # b3 scalar
        ],
        out_specs=pl.BlockSpec((tm, 1), lambda i: (i, 0)),
        compiler_params=pltpu.CompilerParams(
            dimension_semantics=("parallel",)),
        cost_estimate=pl.CostEstimate(
            flops=flops, transcendentals=0, bytes_accessed=bytes_accessed),
    )(x_flat, w1, b1, w2, b2, w3, b3)

    return out_pad[:B]


def init_params(key, in_features):
    """Deterministic init mimicking nn.Linear's U(-1/sqrt(fan_in), 1/sqrt(fan_in)).

    Matmul weights (w1, w2) are stored in bf16 (halves the HBM bytes that
    dominate this kernel's roofline); biases and the final row-weight stay f32.
    """
    k1, k2, k3, k4, k5, k6 = jax.random.split(key, 6)

    def uni(k, shape, fan_in):
        bound = 1.0 / jnp.sqrt(fan_in)
        return jax.random.uniform(k, shape, jnp.float32, -bound, bound)

    w1 = uni(k1, (in_features, 512), in_features).astype(jnp.bfloat16)
    b1 = uni(k2, (1, 512), in_features)
    w2 = uni(k3, (512, 256), 512).astype(jnp.bfloat16)
    b2 = uni(k4, (1, 256), 512)
    # last Linear(256, 1): store weight as a (1, 256) row for the lane reduction
    w3 = uni(k5, (1, 256), 256)
    b3 = uni(k6, (1, 1), 256)
    return (w1, b1, w2, b2, w3, b3)


if __name__ == "__main__":
    # Small shapes consistent with the module: img_shape = (C, H, W) = (4, 16, 16)
    B, C, H, W = 2, 4, 16, 16
    D = C * H * W  # 1024

    key = jax.random.PRNGKey(0)
    k_img, k_params = jax.random.split(key)
    img = jax.random.normal(k_img, (B, C, H, W), dtype=jnp.float32)
    params = init_params(k_params, D)

    validity = discriminator_forward(img, params)
    validity = jax.block_until_ready(validity)

    # sanity: shape must be (B, 1) just like the PyTorch module's output
    assert validity.shape == (B, 1), validity.shape
    assert validity.dtype == jnp.float32
    assert bool(jnp.all(jnp.isfinite(validity)))

    print("KERNEL_OK")
</pallas_src>

<mosaic_0001>
module attributes {stable_mosaic.version = 11 : i64} {
  func.func @discriminator_kernel(%arg0: i32, %arg1: memref<16x1024xbf16, #tpu.memory_space<vmem>>, %arg2: memref<1024x512xbf16, #tpu.memory_space<vmem>>, %arg3: memref<1x512xf32, #tpu.memory_space<vmem>>, %arg4: memref<512x256xbf16, #tpu.memory_space<vmem>>, %arg5: memref<1x256xf32, #tpu.memory_space<vmem>>, %arg6: memref<1x256xf32, #tpu.memory_space<vmem>>, %arg7: memref<1x1xf32, #tpu.memory_space<smem>>, %arg8: memref<16x1xf32, #tpu.memory_space<vmem>>) attributes {dimension_semantics = [#tpu.dimension_semantics<parallel>], iteration_bounds = array<i64: 1>, scalar_prefetch = 0 : i64, scratch_operands = 0 : i64, tpu.core_type = #tpu.core_type<tc>, window_params = [{transform_indices = @transform_0, window_bounds = array<i64: 16, 1024>}, {pipeline_mode = #tpu.pipeline_mode<synchronous>, transform_indices = @transform_1, window_bounds = array<i64: 1024, 512>}, {pipeline_mode = #tpu.pipeline_mode<synchronous>, transform_indices = @transform_2, window_bounds = array<i64: 1, 512>}, {pipeline_mode = #tpu.pipeline_mode<synchronous>, transform_indices = @transform_3, window_bounds = array<i64: 512, 256>}, {pipeline_mode = #tpu.pipeline_mode<synchronous>, transform_indices = @transform_4, window_bounds = array<i64: 1, 256>}, {pipeline_mode = #tpu.pipeline_mode<synchronous>, transform_indices = @transform_5, window_bounds = array<i64: 1, 256>}, {transform_indices = @transform_6, window_bounds = array<i64: 1, 1>}, {transform_indices = @transform_7, window_bounds = array<i64: 16, 1>}]} {
    %c0 = arith.constant 0 : index
    %c0_0 = arith.constant 0 : index
    %0 = vector.load %arg1[%c0, %c0_0] : memref<16x1024xbf16, #tpu.memory_space<vmem>>, vector<16x1024xbf16>
    %c0_1 = arith.constant 0 : index
    %c0_2 = arith.constant 0 : index
    %1 = vector.load %arg2[%c0_1, %c0_2] : memref<1024x512xbf16, #tpu.memory_space<vmem>>, vector<1024x512xbf16>
    %cst = arith.constant dense<0.000000e+00> : vector<16x512xf32>
    %2 = tpu.matmul %0, %1, %cst {dimension_numbers = #tpu.dot_dimension_numbers<[1], [0], [0], [1], [0, 0, 1, 1], [], []>} : vector<16x1024xbf16>, vector<1024x512xbf16>, vector<16x512xf32> -> vector<16x512xf32>
    %c0_3 = arith.constant 0 : index
    %c0_4 = arith.constant 0 : index
    %3 = vector.load %arg3[%c0_3, %c0_4] : memref<1x512xf32, #tpu.memory_space<vmem>>, vector<1x512xf32>
    %4 = vector.broadcast %3 : vector<1x512xf32> to vector<16x512xf32>
    %5 = arith.addf %2, %4 : vector<16x512xf32>
    %cst_5 = arith.constant 0.000000e+00 : f32
    %6 = vector.broadcast %cst_5 : f32 to vector<16x512xf32>
    %7 = arith.cmpf ogt, %5, %6 : vector<16x512xf32>
    %cst_6 = arith.constant 2.000000e-01 : f32
    %8 = vector.broadcast %cst_6 : f32 to vector<16x512xf32>
    %9 = arith.mulf %8, %5 : vector<16x512xf32>
    %10 = arith.select %7, %5, %9 : vector<16x512xi1>, vector<16x512xf32>
    %11 = arith.truncf %10 : vector<16x512xf32> to vector<16x512xbf16>
    %c0_7 = arith.constant 0 : index
    %c0_8 = arith.constant 0 : index
    %12 = vector.load %arg4[%c0_7, %c0_8] : memref<512x256xbf16, #tpu.memory_space<vmem>>, vector<512x256xbf16>
    %cst_9 = arith.constant dense<0.000000e+00> : vector<16x256xf32>
    %13 = tpu.matmul %11, %12, %cst_9 {dimension_numbers = #tpu.dot_dimension_numbers<[1], [0], [0], [1], [0, 0, 1, 1], [], []>} : vector<16x512xbf16>, vector<512x256xbf16>, vector<16x256xf32> -> vector<16x256xf32>
    %c0_10 = arith.constant 0 : index
    %c0_11 = arith.constant 0 : index
    %14 = vector.load %arg5[%c0_10, %c0_11] : memref<1x256xf32, #tpu.memory_space<vmem>>, vector<1x256xf32>
    %15 = vector.broadcast %14 : vector<1x256xf32> to vector<16x256xf32>
    %16 = arith.addf %13, %15 : vector<16x256xf32>
    %cst_12 = arith.constant 0.000000e+00 : f32
    %17 = vector.broadcast %cst_12 : f32 to vector<16x256xf32>
    %18 = arith.cmpf ogt, %16, %17 : vector<16x256xf32>
    %cst_13 = arith.constant 2.000000e-01 : f32
    %19 = vector.broadcast %cst_13 : f32 to vector<16x256xf32>
    %20 = arith.mulf %19, %16 : vector<16x256xf32>
    %21 = arith.select %18, %16, %20 : vector<16x256xi1>, vector<16x256xf32>
    %c0_14 = arith.constant 0 : index
    %c0_15 = arith.constant 0 : index
    %22 = vector.load %arg6[%c0_14, %c0_15] : memref<1x256xf32, #tpu.memory_space<vmem>>, vector<1x256xf32>
    %23 = vector.broadcast %22 : vector<1x256xf32> to vector<16x256xf32>
    %24 = arith.mulf %21, %23 : vector<16x256xf32>
    %cst_16 = arith.constant dense<0.000000e+00> : vector<16xf32>
    %25 = vector.multi_reduction <add>, %24, %cst_16 [1] : vector<16x256xf32> to vector<16xf32>
    %26 = vector.shape_cast %25 : vector<16xf32> to vector<16x1xf32>
    %c0_17 = arith.constant 0 : index
    %c0_18 = arith.constant 0 : index
    %27 = memref.load %arg7[%c0_17, %c0_18] : memref<1x1xf32, #tpu.memory_space<smem>>
    %28 = vector.broadcast %27 : f32 to vector<16x1xf32>
    %29 = arith.addf %26, %28 : vector<16x1xf32>
    %c0_19 = arith.constant 0 : index
    %c0_20 = arith.constant 0 : index
    %30 = vector.load %arg8[%c0_19, %c0_20] : memref<16x1xf32, #tpu.memory_space<vmem>>, vector<16x1xf32>
    tpu.vector_store %arg8[%c0_19, %c0_20], %29 {strides = array<i32>} : memref<16x1xf32, #tpu.memory_space<vmem>>, vector<16x1xf32>,
    return
  }
  func.func @transform_0(%arg0: i32) -> (i32, i32) {
    %c0_i32 = arith.constant 0 : i32
    %c0_i32_0 = arith.constant 0 : i32
    return %arg0, %c0_i32 : i32, i32
  }
  func.func @transform_1(%arg0: i32) -> (i32, i32) {
    %c0_i32 = arith.constant 0 : i32
    %c0_i32_0 = arith.constant 0 : i32
    %c0_i32_1 = arith.constant 0 : i32
    return %c0_i32, %c0_i32_0 : i32, i32
  }
  func.func @transform_2(%arg0: i32) -> (i32, i32) {
    %c0_i32 = arith.constant 0 : i32
    %c0_i32_0 = arith.constant 0 : i32
    %c0_i32_1 = arith.constant 0 : i32
    return %c0_i32, %c0_i32_0 : i32, i32
  }
  func.func @transform_3(%arg0: i32) -> (i32, i32) {
    %c0_i32 = arith.constant 0 : i32
    %c0_i32_0 = arith.constant 0 : i32
    %c0_i32_1 = arith.constant 0 : i32
    return %c0_i32, %c0_i32_0 : i32, i32
  }
  func.func @transform_4(%arg0: i32) -> (i32, i32) {
    %c0_i32 = arith.constant 0 : i32
    %c0_i32_0 = arith.constant 0 : i32
    %c0_i32_1 = arith.constant 0 : i32
    return %c0_i32, %c0_i32_0 : i32, i32
  }
  func.func @transform_5(%arg0: i32) -> (i32, i32) {
    %c0_i32 = arith.constant 0 : i32
    %c0_i32_0 = arith.constant 0 : i32
    %c0_i32_1 = arith.constant 0 : i32
    return %c0_i32, %c0_i32_0 : i32, i32
  }
  func.func @transform_6(%arg0: i32) -> (i32, i32) {
    %c0_i32 = arith.constant 0 : i32
    %c0_i32_0 = arith.constant 0 : i32
    %c0_i32_1 = arith.constant 0 : i32
    return %c0_i32, %c0_i32_0 : i32, i32
  }
  func.func @transform_7(%arg0: i32) -> (i32, i32) {
    %c0_i32 = arith.constant 0 : i32
    %c0_i32_0 = arith.constant 0 : i32
    return %arg0, %c0_i32 : i32, i32
  }
}

</mosaic_0001>

<bundles_post_ra>
// kernel: tpu_custom_call.1
= control target key start
LH: loop header
LB: loop body
LE: loop exit
PB: predicated region body
PF: predicated region fallthrough
CT: control target
= control target key end

     0   :  { %13 = vsyncpa [#allocation4], 0  ;;  %s3680_s0 = inlined_call_operand.hbm [shape: bf16[16,1024], index: 0, kind: input, shape index: {}]   ;;  %s3681_s1 = inlined_call_operand.hbm [shape: bf16[1024,512], index: 1, kind: input, shape index: {}]   ;;  %s3682_s2 = inlined_call_operand.vmem [shape: f32[1,512], index: 2, kind: input, shape index: {}]   ;;  %s3683_s3 = inlined_call_operand.hbm [shape: bf16[512,256], index: 3, kind: input, shape index: {}]   ;;  %s3684_s4 = inlined_call_operand.vmem [shape: f32[1,256], index: 4, kind: input, shape index: {}]   ;;  %s3685_s5 = inlined_call_operand.vmem [shape: f32[1,256], index: 5, kind: input, shape index: {}]   ;;  %s3686_s6 = inlined_call_operand.<no memory space> [shape: f32[1,1], index: 6, kind: input, shape index: {}]   ;;  %s3687_s7 = inlined_call_operand.vmem [shape: f32[16,1], index: 7, kind: output, shape index: {}]  }
   0x1   :  { %14 = vsyncpa [#allocation6], 0  ;;  %s3502_s24 = smov [#allocation5]   ;;  %s3432_s28 = scalar_lea.hbm %s3681_s1, 32768 }
   0x2   :  { %s32_s25 = sshll.u32 %s3502_s24, 4  ;;  %p3433_p0 = scmp.ne.s32.totalorder %s3681_s1, %s3432_s28  ;;  %s33_s25 = int_to_ptr.vmem [resolvable:$true] %s32_s25 }
   0x3   :  { %p3436_p1 = scmp.lt.u32.totalorder %s3432_s28, %s3681_s1 }
   0x5   :  { %p3438_p2 = pnand %p3436_p1, %p3433_p0 }
   0x7   :  { %3441 = shalt.err (!%p3438_p2)
}
   0x8   :  { %s3442_s10 = scalar_lea.vmem %s33_s25, 32768  ;;  %p3447_p4 = scmp.lt.s32.totalorder %s33_s25, %s33_s25 }
   0x9   :  { %p3443_p3 = scmp.ne.s32.totalorder %s33_s25, %s3442_s10  ;;  %p3448_p5 = scmp.lt.s32.totalorder %s3442_s10, %s3442_s10 }
   0xb   :  { %p3449_p6 = por %p3448_p5, %p3447_p4 }
   0xd   :  { %p3450_p7 = pnand %p3449_p6, %p3443_p3 }
   0xf   :  { %3453 = shalt.err (!%p3450_p7)
}
  0x10   :  { %s3503_s11 = smov 256   ;;  %s3504_s12 = smov 16  }
  0x11   :  { %38 = dma.hbm_to_vmem [thread:$0]  %s3681_s1, 32768, %s33_s25, [#allocation6], %s3503_s11, %s3503_s11, %s3504_s12  }
  0x12   :  { %s3505_s15 = smov [#allocation3]   ;;  %s3454_s19 = scalar_lea.hbm %s3680_s0, 1024 }
  0x13   :  { %s20_s16 = sshll.u32 %s3505_s15, 4  ;;  %p3455_p8 = scmp.ne.s32.totalorder %s3680_s0, %s3454_s19  ;;  %s21_s16 = int_to_ptr.vmem [resolvable:$true] %s20_s16 }
  0x14   :  { %p3458_p9 = scmp.lt.u32.totalorder %s3454_s19, %s3680_s0 }
  0x16   :  { %p3460_p10 = pnand %p3458_p9, %p3455_p8 }
  0x18   :  { %3463 = shalt.err (!%p3460_p10)
}
  0x19   :  { %s3464_s24 = scalar_lea.vmem %s21_s16, 1024  ;;  %p3469_p12 = scmp.lt.s32.totalorder %s21_s16, %s21_s16 }
  0x1a   :  { %p3465_p11 = scmp.ne.s32.totalorder %s21_s16, %s3464_s24  ;;  %p3470_p13 = scmp.lt.s32.totalorder %s3464_s24, %s3464_s24 }
  0x1c   :  { %p3471_p0 = por %p3470_p13, %p3469_p12 }
  0x1e   :  { %p3472_p1 = pnand %p3471_p0, %p3465_p11 }
  0x20   :  { %3475 = shalt.err (!%p3472_p1)
}
  0x21   :  { %s3506_s1 = smov 512   ;;  %s3507_s25 = smov 32  }
  0x22   :  { %26 = dma.hbm_to_vmem [thread:$0]  %s3680_s0, 1024, %s21_s16, [#allocation4], %s3506_s1, %s3506_s1, %s3507_s25  }
  0x23   :  { %s3508_s28 = smov [#allocation7]   ;;  %s3476_s9 = scalar_lea.hbm %s3683_s3, 8192 }
  0x24   :  { %s46_s29 = sshll.u32 %s3508_s28, 4  ;;  %p3477_p2 = scmp.ne.s32.totalorder %s3683_s3, %s3476_s9  ;;  %s47_s29 = int_to_ptr.vmem [resolvable:$true] %s46_s29 }
  0x25   :  { %p3480_p3 = scmp.lt.u32.totalorder %s3476_s9, %s3683_s3 }
  0x27   :  { %p3482_p4 = pnand %p3480_p3, %p3477_p2 }
  0x29   :  { %3485 = shalt.err (!%p3482_p4)
}
  0x2a   :  { %s3486_s14 = scalar_lea.vmem %s47_s29, 8192  ;;  %p3491_p6 = scmp.lt.s32.totalorder %s47_s29, %s47_s29 }
  0x2b   :  { %p3487_p5 = scmp.ne.s32.totalorder %s47_s29, %s3486_s14  ;;  %p3492_p7 = scmp.lt.s32.totalorder %s3486_s14, %s3486_s14 }
  0x2d   :  { %p3493_p8 = por %p3492_p7, %p3491_p6 }
  0x2f   :  { %p3494_p9 = pnand %p3493_p8, %p3487_p5 }
  0x31   :  { %3497 = shalt.err (!%p3494_p9)
}
  0x32   :  { %s3509_s0 = smov 128   ;;  %s3510_s15 = smov 8  }
  0x33   :  { %52 = dma.hbm_to_vmem [thread:$0]  %s3683_s3, 8192, %s47_s29, [#allocation6], %s3509_s0, %s3509_s0, %s3510_s15  }
  0x34   :  { %3498 = dma.done.wait [#allocation4], 1024  }
  0x35   :  { %3499 = vsyncadd [#allocation4], 4294966272 }
  0x36   :  { %3500 = dma.done.wait [#allocation6], 40960  }
  0x37   :  { %3501 = vsyncadd [#allocation6], 4294926336  ;;  %v2952_v0 = vld [vmem:[#allocation5 + $0x4] ss:$16 sps:$4 sm:$0xff]   ;;  %v2956_v2 = vld [vmem:[#allocation5] ss:$16 sps:$4 sm:$0xff]  }
  0x38   :  { %v2954_v1 = vld [vmem:[#allocation5 + $0x204] ss:$16 sps:$4 sm:$0xff]   ;;  %1674 = vmatprep.subr.bf16.mxu1 %v2952_v0  ;;  %v2957_v3 = vld [vmem:[#allocation5 + $0x200] ss:$16 sps:$4 sm:$0xff]   ;;  %v69_v50 = vld [vmem:[#allocation3 + $0x8] sm:$0xff]  ;;  %vm2566_vm12 = vcmask 7168  }
  0x39   :  { %1717 = vmatprep.subr.bf16.mxu0 %v2954_v1  ;;  %v2958_v4 = vld [vmem:[#allocation5 + $0x24] ss:$16 sps:$4 sm:$0xff]   ;;  %1675 = vmatpush1.bf16.msra.mxu1 %v2956_v2  ;;  %v2962_v6 = vld [vmem:[#allocation5 + $0x20] ss:$16 sps:$4 sm:$0xff]   ;;  %v73_v51 = vld [vmem:[#allocation3 + $0x28] sm:$0xff] }
  0x3a   :  { %1718 = vmatpush1.bf16.msra.mxu0 %v2957_v3  ;;  %v2960_v5 = vld [vmem:[#allocation5 + $0x224] ss:$16 sps:$4 sm:$0xff]   ;;  %1676 = vmatprep.subr.bf16.mxu1 %v2958_v4  ;;  %v2963_v7 = vld [vmem:[#allocation5 + $0x220] ss:$16 sps:$4 sm:$0xff]   ;;  %v3587_v55 = vcombine.high %v69_v50, %v73_v51 }
  0x3b   :  { %1719 = vmatprep.subr.bf16.mxu0 %v2960_v5  ;;  %v2964_v8 = vld [vmem:[#allocation5 + $0x44] ss:$16 sps:$4 sm:$0xff]   ;;  %v2968_v10 = vld [vmem:[#allocation5 + $0x40] ss:$16 sps:$4 sm:$0xff]  }
  0x3c   :  { %v2966_v9 = vld [vmem:[#allocation5 + $0x244] ss:$16 sps:$4 sm:$0xff]   ;;  %v2969_v11 = vld [vmem:[#allocation5 + $0x240] ss:$16 sps:$4 sm:$0xff]   ;;  %1749 = vmatprep.mubr.bf16.mxu0 %v3587_v55 }
  0x3d   :  { %1677 = vmatpush1.bf16.msra.mxu1 %v2962_v6  ;;  %v2970_v12 = vld [vmem:[#allocation5 + $0x64] ss:$16 sps:$4 sm:$0xff]   ;;  %v2974_v14 = vld [vmem:[#allocation5 + $0x60] ss:$16 sps:$4 sm:$0xff]  }
  0x3e   :  { %1720 = vmatpush1.bf16.msra.mxu0 %v2963_v7  ;;  %1678 = vmatprep.subr.bf16.mxu1 %v2964_v8  ;;  %v2972_v13 = vld [vmem:[#allocation5 + $0x264] ss:$16 sps:$4 sm:$0xff]   ;;  %v2975_v15 = vld [vmem:[#allocation5 + $0x260] ss:$16 sps:$4 sm:$0xff]   ;;  %v3053_v7 = vld [vmem:[#allocation5 + $0xc] ss:$16 sps:$4 sm:$0xff]  }
  0x3f   :  { %1721 = vmatprep.subr.bf16.mxu0 %v2966_v9  ;;  %v2976_v16 = vld [vmem:[#allocation5 + $0x84] ss:$16 sps:$4 sm:$0xff]   ;;  %v2980_v18 = vld [vmem:[#allocation5 + $0x80] ss:$16 sps:$4 sm:$0xff]   ;;  %v3592_v9 = vcombine.low %v69_v50, %v73_v51  ;;  %v3105_v50 = vld [vmem:[#allocation5 + $0x128] ss:$16 sps:$4 sm:$0xff]  }
  0x40   :  { %v2978_v17 = vld [vmem:[#allocation5 + $0x284] ss:$16 sps:$4 sm:$0xff]   ;;  %v2981_v19 = vld [vmem:[#allocation5 + $0x280] ss:$16 sps:$4 sm:$0xff]  }
  0x41   :  { %1679 = vmatpush1.bf16.msra.mxu1 %v2968_v10  ;;  %v2982_v20 = vld [vmem:[#allocation5 + $0xa4] ss:$16 sps:$4 sm:$0xff]   ;;  %v2986_v22 = vld [vmem:[#allocation5 + $0xa0] ss:$16 sps:$4 sm:$0xff]  }
  0x42   :  { %1722 = vmatpush1.bf16.msra.mxu0 %v2969_v11  ;;  %1680 = vmatprep.subr.bf16.mxu1 %v2970_v12  ;;  %v2984_v21 = vld [vmem:[#allocation5 + $0x2a4] ss:$16 sps:$4 sm:$0xff]   ;;  %v2987_v23 = vld [vmem:[#allocation5 + $0x2a0] ss:$16 sps:$4 sm:$0xff]   ;;  %v3051_v11 = vld [vmem:[#allocation5 + $0x8] ss:$16 sps:$4 sm:$0xff]  }
  0x43   :  { %1723 = vmatprep.subr.bf16.mxu0 %v2972_v13  ;;  %v2988_v24 = vld [vmem:[#allocation5 + $0xc4] ss:$16 sps:$4 sm:$0xff]   ;;  %v2992_v26 = vld [vmem:[#allocation5 + $0xc0] ss:$16 sps:$4 sm:$0xff]   ;;  %v3059_v13 = vld [vmem:[#allocation5 + $0x2c] ss:$16 sps:$4 sm:$0xff]  }
  0x44   :  { %v2990_v25 = vld [vmem:[#allocation5 + $0x2c4] ss:$16 sps:$4 sm:$0xff]   ;;  %v2993_v27 = vld [vmem:[#allocation5 + $0x2c0] ss:$16 sps:$4 sm:$0xff]  }
  0x45   :  { %1681 = vmatpush1.bf16.msra.mxu1 %v2974_v14  ;;  %v2994_v28 = vld [vmem:[#allocation5 + $0xe4] ss:$16 sps:$4 sm:$0xff]   ;;  %v2998_v30 = vld [vmem:[#allocation5 + $0xe0] ss:$16 sps:$4 sm:$0xff]  }
  0x46   :  { %1724 = vmatpush1.bf16.msra.mxu0 %v2975_v15  ;;  %1682 = vmatprep.subr.bf16.mxu1 %v2976_v16  ;;  %v2996_v29 = vld [vmem:[#allocation5 + $0x2e4] ss:$16 sps:$4 sm:$0xff]   ;;  %v2999_v31 = vld [vmem:[#allocation5 + $0x2e0] ss:$16 sps:$4 sm:$0xff]   ;;  %v3057_v15 = vld [vmem:[#allocation5 + $0x28] ss:$16 sps:$4 sm:$0xff]  }
  0x47   :  { %1725 = vmatprep.subr.bf16.mxu0 %v2978_v17  ;;  %v3000_v32 = vld [vmem:[#allocation5 + $0x104] ss:$16 sps:$4 sm:$0xff]   ;;  %v3004_v34 = vld [vmem:[#allocation5 + $0x100] ss:$16 sps:$4 sm:$0xff]   ;;  %v3065_v17 = vld [vmem:[#allocation5 + $0x4c] ss:$16 sps:$4 sm:$0xff]  }
  0x48   :  { %v3002_v33 = vld [vmem:[#allocation5 + $0x304] ss:$16 sps:$4 sm:$0xff]   ;;  %v3005_v35 = vld [vmem:[#allocation5 + $0x300] ss:$16 sps:$4 sm:$0xff]  }
  0x49   :  { %1683 = vmatpush1.bf16.msra.mxu1 %v2980_v18  ;;  %v3006_v36 = vld [vmem:[#allocation5 + $0x124] ss:$16 sps:$4 sm:$0xff]   ;;  %v3010_v38 = vld [vmem:[#allocation5 + $0x120] ss:$16 sps:$4 sm:$0xff]  }
  0x4a   :  { %1726 = vmatpush1.bf16.msra.mxu0 %v2981_v19  ;;  %1684 = vmatprep.subr.bf16.mxu1 %v2982_v20  ;;  %v3008_v37 = vld [vmem:[#allocation5 + $0x324] ss:$16 sps:$4 sm:$0xff]   ;;  %v3011_v39 = vld [vmem:[#allocation5 + $0x320] ss:$16 sps:$4 sm:$0xff]   ;;  %v3063_v19 = vld [vmem:[#allocation5 + $0x48] ss:$16 sps:$4 sm:$0xff]  }
  0x4b   :  { %1727 = vmatprep.subr.bf16.mxu0 %v2984_v21  ;;  %v3012_v40 = vld [vmem:[#allocation5 + $0x144] ss:$16 sps:$4 sm:$0xff]   ;;  %v3016_v42 = vld [vmem:[#allocation5 + $0x140] ss:$16 sps:$4 sm:$0xff]   ;;  %v3071_v21 = vld [vmem:[#allocation5 + $0x6c] ss:$16 sps:$4 sm:$0xff]  }
  0x4c   :  { %v3014_v41 = vld [vmem:[#allocation5 + $0x344] ss:$16 sps:$4 sm:$0xff]   ;;  %v3017_v43 = vld [vmem:[#allocation5 + $0x340] ss:$16 sps:$4 sm:$0xff]  }
  0x4d   :  { %1685 = vmatpush1.bf16.msra.mxu1 %v2986_v22  ;;  %v3018_v44 = vld [vmem:[#allocation5 + $0x164] ss:$16 sps:$4 sm:$0xff]   ;;  %v3022_v46 = vld [vmem:[#allocation5 + $0x160] ss:$16 sps:$4 sm:$0xff]  }
  0x4e   :  { %1728 = vmatpush1.bf16.msra.mxu0 %v2987_v23  ;;  %1686 = vmatprep.subr.bf16.mxu1 %v2988_v24  ;;  %v3020_v45 = vld [vmem:[#allocation5 + $0x364] ss:$16 sps:$4 sm:$0xff]   ;;  %v3023_v47 = vld [vmem:[#allocation5 + $0x360] ss:$16 sps:$4 sm:$0xff]   ;;  %v3069_v23 = vld [vmem:[#allocation5 + $0x68] ss:$16 sps:$4 sm:$0xff]  }
  0x4f   :  { %1729 = vmatprep.subr.bf16.mxu0 %v2990_v25  ;;  %v68_v48 = vld [vmem:[#allocation3] sm:$0xff]  ;;  %v3077_v25 = vld [vmem:[#allocation5 + $0x8c] ss:$16 sps:$4 sm:$0xff]  }
  0x50   :  { %v72_v49 = vld [vmem:[#allocation3 + $0x20] sm:$0xff] }
  0x51   :  { %1687 = vmatpush1.bf16.msra.mxu1 %v2992_v26  ;;  %v3024_v52 = vld [vmem:[#allocation5 + $0x184] ss:$16 sps:$4 sm:$0xff]   ;;  %v2576_v53 = vcombine.high %v68_v48, %v72_v49  ;;  %v3028_v56 = vld [vmem:[#allocation5 + $0x180] ss:$16 sps:$4 sm:$0xff]   ;;  %v3590_v8 = vcombine.low %v68_v48, %v72_v49  ;;  %v3107_v48 = vld [vmem:[#allocation5 + $0x12c] ss:$16 sps:$4 sm:$0xff]  }
  0x52   :  { %1730 = vmatpush1.bf16.msra.mxu0 %v2993_v27  ;;  %1688 = vmatprep.subr.bf16.mxu1 %v2994_v28  ;;  %v3026_v54 = vld [vmem:[#allocation5 + $0x384] ss:$16 sps:$4 sm:$0xff]   ;;  %v3029_v57 = vld [vmem:[#allocation5 + $0x380] ss:$16 sps:$4 sm:$0xff]   ;;  %v3075_v27 = vld [vmem:[#allocation5 + $0x88] ss:$16 sps:$4 sm:$0xff]  }
  0x53   :  { %1731 = vmatprep.subr.bf16.mxu0 %v2996_v29  ;;  %1706 = vmatprep.mubr.bf16.mxu1 %v2576_v53  ;;  %v3030_v58 = vld [vmem:[#allocation5 + $0x1a4] ss:$16 sps:$4 sm:$0xff]   ;;  %v3034_v60 = vld [vmem:[#allocation5 + $0x1a0] ss:$16 sps:$4 sm:$0xff]   ;;  %v3083_v29 = vld [vmem:[#allocation5 + $0xac] ss:$16 sps:$4 sm:$0xff]  }
  0x54   :  { %v3032_v59 = vld [vmem:[#allocation5 + $0x3a4] ss:$16 sps:$4 sm:$0xff]   ;;  %v3035_v61 = vld [vmem:[#allocation5 + $0x3a0] ss:$16 sps:$4 sm:$0xff]  }
  0x55   :  { %1689 = vmatpush1.bf16.msra.mxu1 %v2998_v30  ;;  %v3036_v62 = vld [vmem:[#allocation5 + $0x1c4] ss:$16 sps:$4 sm:$0xff]   ;;  %v3040_v0 = vld [vmem:[#allocation5 + $0x1c0] ss:$16 sps:$4 sm:$0xff]  }
  0x56   :  { %1732 = vmatpush1.bf16.msra.mxu0 %v2999_v31  ;;  %1690 = vmatprep.subr.bf16.mxu1 %v3000_v32  ;;  %v3038_v63 = vld [vmem:[#allocation5 + $0x3c4] ss:$16 sps:$4 sm:$0xff]   ;;  %v3041_v1 = vld [vmem:[#allocation5 + $0x3c0] ss:$16 sps:$4 sm:$0xff]   ;;  %v3081_v31 = vld [vmem:[#allocation5 + $0xa8] ss:$16 sps:$4 sm:$0xff]  }
  0x57   :  { %1733 = vmatprep.subr.bf16.mxu0 %v3002_v33  ;;  %v3042_v2 = vld [vmem:[#allocation5 + $0x1e4] ss:$16 sps:$4 sm:$0xff]   ;;  %v3046_v4 = vld [vmem:[#allocation5 + $0x1e0] ss:$16 sps:$4 sm:$0xff]   ;;  %v3089_v33 = vld [vmem:[#allocation5 + $0xcc] ss:$16 sps:$4 sm:$0xff]  }
  0x58   :  { %v3044_v3 = vld [vmem:[#allocation5 + $0x3e4] ss:$16 sps:$4 sm:$0xff]   ;;  %v3047_v5 = vld [vmem:[#allocation5 + $0x3e0] ss:$16 sps:$4 sm:$0xff]  }
  0x59   :  { %1691 = vmatpush1.bf16.msra.mxu1 %v3004_v34  ;;  %v3050_v6 = vld [vmem:[#allocation5 + $0x404] ss:$16 sps:$4 sm:$0xff]   ;;  %v3048_v10 = vld [vmem:[#allocation5 + $0x400] ss:$16 sps:$4 sm:$0xff]  }
  0x5a   :  { %1734 = vmatpush1.bf16.msra.mxu0 %v3005_v35  ;;  %1692 = vmatprep.subr.bf16.mxu1 %v3006_v36  ;;  %v3056_v12 = vld [vmem:[#allocation5 + $0x424] ss:$16 sps:$4 sm:$0xff]   ;;  %v3054_v14 = vld [vmem:[#allocation5 + $0x420] ss:$16 sps:$4 sm:$0xff]  }
  0x5b   :  { %1735 = vmatprep.subr.bf16.mxu0 %v3008_v37  ;;  %v3062_v16 = vld [vmem:[#allocation5 + $0x444] ss:$16 sps:$4 sm:$0xff]   ;;  %v3060_v18 = vld [vmem:[#allocation5 + $0x440] ss:$16 sps:$4 sm:$0xff]   ;;  %v3087_v37 = vld [vmem:[#allocation5 + $0xc8] ss:$16 sps:$4 sm:$0xff]  }
  0x5c   :  { %v3068_v20 = vld [vmem:[#allocation5 + $0x464] ss:$16 sps:$4 sm:$0xff]   ;;  %v3066_v22 = vld [vmem:[#allocation5 + $0x460] ss:$16 sps:$4 sm:$0xff]  }
  0x5d   :  { %1693 = vmatpush1.bf16.msra.mxu1 %v3010_v38  ;;  %v3074_v24 = vld [vmem:[#allocation5 + $0x484] ss:$16 sps:$4 sm:$0xff]   ;;  %v3072_v26 = vld [vmem:[#allocation5 + $0x480] ss:$16 sps:$4 sm:$0xff]  }
  0x5e   :  { %1736 = vmatpush1.bf16.msra.mxu0 %v3011_v39  ;;  %1694 = vmatprep.subr.bf16.mxu1 %v3012_v40  ;;  %v3080_v28 = vld [vmem:[#allocation5 + $0x4a4] ss:$16 sps:$4 sm:$0xff]   ;;  %v3078_v30 = vld [vmem:[#allocation5 + $0x4a0] ss:$16 sps:$4 sm:$0xff]   ;;  %v3095_v40 = vld [vmem:[#allocation5 + $0xec] ss:$16 sps:$4 sm:$0xff]  }
  0x5f   :  { %1737 = vmatprep.subr.bf16.mxu0 %v3014_v41  ;;  %v3086_v32 = vld [vmem:[#allocation5 + $0x4c4] ss:$16 sps:$4 sm:$0xff]   ;;  %v3084_v36 = vld [vmem:[#allocation5 + $0x4c0] ss:$16 sps:$4 sm:$0xff]  }
  0x60   :  { %v3596_v34 = vld [vmem:[#allocation3 + $0x10] sm:$0xff] }
  0x61   :  { %1695 = vmatpush1.bf16.msra.mxu1 %v3016_v42  ;;  %v3598_v35 = vld [vmem:[#allocation3 + $0x30] sm:$0xff]  ;;  %v3093_v42 = vld [vmem:[#allocation5 + $0xe8] ss:$16 sps:$4 sm:$0xff]  }
  0x62   :  { %1738 = vmatpush1.bf16.msra.mxu0 %v3017_v43  ;;  %1696 = vmatprep.subr.bf16.mxu1 %v3018_v44  ;;  %v3602_v38 = vcombine.high %v3596_v34, %v3598_v35  ;;  %v3092_v39 = vld [vmem:[#allocation5 + $0x4e4] ss:$16 sps:$4 sm:$0xff]   ;;  %v3090_v41 = vld [vmem:[#allocation5 + $0x4e0] ss:$16 sps:$4 sm:$0xff]   ;;  %v3101_v44 = vld [vmem:[#allocation5 + $0x10c] ss:$16 sps:$4 sm:$0xff]  }
  0x63   :  { %1739 = vmatprep.subr.bf16.mxu0 %v3020_v45  ;;  %v3098_v43 = vld [vmem:[#allocation5 + $0x504] ss:$16 sps:$4 sm:$0xff]   ;;  %v3096_v45 = vld [vmem:[#allocation5 + $0x500] ss:$16 sps:$4 sm:$0xff]  }
  0x64   :  { %v3102_v49 = vld [vmem:[#allocation5 + $0x520] ss:$16 sps:$4 sm:$0xff]   ;;  %v3110_v51 = vld [vmem:[#allocation5 + $0x544] ss:$16 sps:$4 sm:$0xff]  }
  0x65   :  { %1697 = vmatpush1.bf16.msra.mxu1 %v3022_v46  ;;  %v3099_v46 = vld [vmem:[#allocation5 + $0x108] ss:$16 sps:$4 sm:$0xff]  }
  0x66   :  { %1740 = vmatpush1.bf16.msra.mxu0 %v3023_v47  ;;  %1698 = vmatprep.subr.bf16.mxu1 %v3024_v52  ;;  %v3104_v47 = vld [vmem:[#allocation5 + $0x524] ss:$16 sps:$4 sm:$0xff]   ;;  %v3113_v52 = vld [vmem:[#allocation5 + $0x14c] ss:$16 sps:$4 sm:$0xff]  }
  0x67   :  { %1741 = vmatprep.subr.bf16.mxu0 %v3026_v54  ;;  %v3111_v54 = vld [vmem:[#allocation5 + $0x148] ss:$16 sps:$4 sm:$0xff]  }
  0x69   :  { %1699 = vmatpush1.bf16.msra.mxu1 %v3028_v56  ;;  %v3116_v56 = vld [vmem:[#allocation5 + $0x564] ss:$16 sps:$4 sm:$0xff]  }
  0x6a   :  { %1742 = vmatpush1.bf16.msra.mxu0 %v3029_v57  ;;  %1700 = vmatprep.subr.bf16.mxu1 %v3030_v58  ;;  %v3119_v57 = vld [vmem:[#allocation5 + $0x16c] ss:$16 sps:$4 sm:$0xff]   ;;  %v3114_v58 = vld [vmem:[#allocation5 + $0x560] ss:$16 sps:$4 sm:$0xff]  }
  0x6b   :  { %1743 = vmatprep.subr.bf16.mxu0 %v3032_v59  ;;  %v3117_v59 = vld [vmem:[#allocation5 + $0x168] ss:$16 sps:$4 sm:$0xff]  }
  0x6d   :  { %1701 = vmatpush1.bf16.msra.mxu1 %v3034_v60  ;;  %v3122_v60 = vld [vmem:[#allocation5 + $0x584] ss:$16 sps:$4 sm:$0xff]  }
  0x6e   :  { %1744 = vmatpush1.bf16.msra.mxu0 %v3035_v61  ;;  %1702 = vmatprep.subr.bf16.mxu1 %v3036_v62  ;;  %v3125_v61 = vld [vmem:[#allocation5 + $0x18c] ss:$16 sps:$4 sm:$0xff]   ;;  %v3120_v62 = vld [vmem:[#allocation5 + $0x580] ss:$16 sps:$4 sm:$0xff]  }
  0x6f   :  { %1745 = vmatprep.subr.bf16.mxu0 %v3038_v63  ;;  %v3123_v63 = vld [vmem:[#allocation5 + $0x188] ss:$16 sps:$4 sm:$0xff]  }
  0x71   :  { %1703 = vmatpush1.bf16.msra.mxu1 %v3040_v0  ;;  %v3128_v0 = vld [vmem:[#allocation5 + $0x5a4] ss:$16 sps:$4 sm:$0xff]  }
  0x72   :  { %1746 = vmatpush1.bf16.msra.mxu0 %v3041_v1  ;;  %1704 = vmatprep.subr.bf16.mxu1 %v3042_v2  ;;  %v3131_v1 = vld [vmem:[#allocation5 + $0x1ac] ss:$16 sps:$4 sm:$0xff]   ;;  %v3126_v2 = vld [vmem:[#allocation5 + $0x5a0] ss:$16 sps:$4 sm:$0xff]  }
  0x73   :  { %1747 = vmatprep.subr.bf16.mxu0 %v3044_v3  ;;  %v3129_v3 = vld [vmem:[#allocation5 + $0x1a8] ss:$16 sps:$4 sm:$0xff]  }
  0x75   :  { %1705 = vmatpush1.bf16.msra.mxu1 %v3046_v4  ;;  %v3134_v4 = vld [vmem:[#allocation5 + $0x5c4] ss:$16 sps:$4 sm:$0xff]  }
  0x76   :  { %1748 = vmatpush1.bf16.msra.mxu0 %v3047_v5  ;;  %1846 = vmatprep.subr.bf16.mxu1 %v3053_v7  ;;  %v3137_v5 = vld [vmem:[#allocation5 + $0x1cc] ss:$16 sps:$4 sm:$0xff]   ;;  %v3135_v7 = vld [vmem:[#allocation5 + $0x1c8] ss:$16 sps:$4 sm:$0xff]  }
  0x77   :  { %1760 = vmatprep.subr.bf16.mxu0 %v3050_v6  ;;  %v3132_v6 = vld [vmem:[#allocation5 + $0x5c0] ss:$16 sps:$4 sm:$0xff]  }
  0x78   :  { %1707 = vmatmul.mubr.bf16.vlgmr.msra.gmra.mrb[0].mxu1 %v3590_v8 }
  0x79   :  { %1750 = vmatmul.mubr.bf16.vlgmr.msra.gmra.mrb[0].mxu0 %v3592_v9  ;;  %1847 = vmatpush1.bf16.msra.mxu1 %v3051_v11  ;;  %v3143_v11 = vld [vmem:[#allocation5 + $0x1ec] ss:$16 sps:$4 sm:$0xff]  }
  0x7a   :  { %1761 = vmatpush1.bf16.msra.mxu0 %v3048_v10  ;;  %1848 = vmatprep.subr.bf16.mxu1 %v3059_v13  ;;  %v3140_v10 = vld [vmem:[#allocation5 + $0x5e4] ss:$16 sps:$4 sm:$0xff]   ;;  %v3141_v13 = vld [vmem:[#allocation5 + $0x1e8] ss:$16 sps:$4 sm:$0xff]  }
  0x7b   :  { %1762 = vmatprep.subr.bf16.mxu0 %v3056_v12  ;;  %1878 = vmatprep.mubr.bf16.mxu1 %v2576_v53  ;;  %v3108_v53 = vld [vmem:[#allocation5 + $0x540] ss:$16 sps:$4 sm:$0xff]  }
  0x7c   :  { %1792 = vmatprep.mubr.bf16.mxu0 %v3602_v38  ;;  %v3138_v12 = vld [vmem:[#allocation5 + $0x5e0] ss:$16 sps:$4 sm:$0xff]  }
  0x7d   :  { %1849 = vmatpush1.bf16.msra.mxu1 %v3057_v15  ;;  %v3149_v15 = vld [vmem:[#allocation5 + $0x20c] ss:$16 sps:$4 sm:$0xff]  }
  0x7e   :  { %1763 = vmatpush1.bf16.msra.mxu0 %v3054_v14  ;;  %1850 = vmatprep.subr.bf16.mxu1 %v3065_v17  ;;  %v3146_v14 = vld [vmem:[#allocation5 + $0x604] ss:$16 sps:$4 sm:$0xff]   ;;  %v3144_v17 = vld [vmem:[#allocation5 + $0x600] ss:$16 sps:$4 sm:$0xff]  }
  0x7f   :  { %1764 = vmatprep.subr.bf16.mxu0 %v3062_v16  ;;  %v3607_v16 = vcombine.low %v3596_v34, %v3598_v35  ;;  %v3173_v34 = vld [vmem:[#allocation5 + $0x28c] ss:$16 sps:$4 sm:$0xff]   ;;  %v3168_v35 = vld [vmem:[#allocation5 + $0x680] ss:$16 sps:$4 sm:$0xff]  }
  0x81   :  { %1851 = vmatpush1.bf16.msra.mxu1 %v3063_v19  ;;  %v3152_v19 = vld [vmem:[#allocation5 + $0x624] ss:$16 sps:$4 sm:$0xff]  }
  0x82   :  { %1765 = vmatpush1.bf16.msra.mxu0 %v3060_v18  ;;  %1852 = vmatprep.subr.bf16.mxu1 %v3071_v21  ;;  %v3147_v18 = vld [vmem:[#allocation5 + $0x208] ss:$16 sps:$4 sm:$0xff]  }
  0x83   :  { %1766 = vmatprep.subr.bf16.mxu0 %v3068_v20  ;;  %v3155_v20 = vld [vmem:[#allocation5 + $0x22c] ss:$16 sps:$4 sm:$0xff]  }
  0x84   :  { %v3609_v21 = vld [vmem:[#allocation3 + $0x18] sm:$0xff] }
  0x85   :  { %1853 = vmatpush1.bf16.msra.mxu1 %v3069_v23  ;;  %v3150_v23 = vld [vmem:[#allocation5 + $0x620] ss:$16 sps:$4 sm:$0xff]  }
  0x86   :  { %1767 = vmatpush1.bf16.msra.mxu0 %v3066_v22  ;;  %1854 = vmatprep.subr.bf16.mxu1 %v3077_v25  ;;  %v3611_v22 = vld [vmem:[#allocation3 + $0x38] sm:$0xff] }
  0x87   :  { %1768 = vmatprep.subr.bf16.mxu0 %v3074_v24  ;;  %v3153_v24 = vld [vmem:[#allocation5 + $0x228] ss:$16 sps:$4 sm:$0xff]   ;;  %v3617_v25 = vcombine.high %v3609_v21, %v3611_v22 }
  0x89   :  { %1855 = vmatpush1.bf16.msra.mxu1 %v3075_v27  ;;  %v3161_v27 = vld [vmem:[#allocation5 + $0x24c] ss:$16 sps:$4 sm:$0xff]  }
  0x8a   :  { %1769 = vmatpush1.bf16.msra.mxu0 %v3072_v26  ;;  %1856 = vmatprep.subr.bf16.mxu1 %v3083_v29  ;;  %v3158_v26 = vld [vmem:[#allocation5 + $0x644] ss:$16 sps:$4 sm:$0xff]   ;;  %v3159_v29 = vld [vmem:[#allocation5 + $0x248] ss:$16 sps:$4 sm:$0xff]  }
  0x8b   :  { %1770 = vmatprep.subr.bf16.mxu0 %v3080_v28  ;;  %v3156_v28 = vld [vmem:[#allocation5 + $0x640] ss:$16 sps:$4 sm:$0xff]  }
  0x8d   :  { %1857 = vmatpush1.bf16.msra.mxu1 %v3081_v31  ;;  %v3162_v31 = vld [vmem:[#allocation5 + $0x660] ss:$16 sps:$4 sm:$0xff]  }
  0x8e   :  { %1771 = vmatpush1.bf16.msra.mxu0 %v3078_v30  ;;  %1858 = vmatprep.subr.bf16.mxu1 %v3089_v33  ;;  %v3167_v30 = vld [vmem:[#allocation5 + $0x26c] ss:$16 sps:$4 sm:$0xff]   ;;  %v3170_v33 = vld [vmem:[#allocation5 + $0x684] ss:$16 sps:$4 sm:$0xff]  }
  0x8f   :  { %1772 = vmatprep.subr.bf16.mxu0 %v3086_v32  ;;  %v3165_v32 = vld [vmem:[#allocation5 + $0x268] ss:$16 sps:$4 sm:$0xff]  }
  0x91   :  { %1859 = vmatpush1.bf16.msra.mxu1 %v3087_v37  ;;  %v3179_v37 = vld [vmem:[#allocation5 + $0x2ac] ss:$16 sps:$4 sm:$0xff]  }
  0x92   :  { %1773 = vmatpush1.bf16.msra.mxu0 %v3084_v36  ;;  %1860 = vmatprep.subr.bf16.mxu1 %v3095_v40  ;;  %v3171_v36 = vld [vmem:[#allocation5 + $0x288] ss:$16 sps:$4 sm:$0xff]  }
  0x93   :  { %1774 = vmatprep.subr.bf16.mxu0 %v3092_v39  ;;  %v3174_v39 = vld [vmem:[#allocation5 + $0x6a0] ss:$16 sps:$4 sm:$0xff]   ;;  %v3177_v40 = vld [vmem:[#allocation5 + $0x2a8] ss:$16 sps:$4 sm:$0xff]  }
  0x95   :  { %1861 = vmatpush1.bf16.msra.mxu1 %v3093_v42  ;;  %v3185_v42 = vld [vmem:[#allocation5 + $0x2cc] ss:$16 sps:$4 sm:$0xff]  }
  0x96   :  { %1775 = vmatpush1.bf16.msra.mxu0 %v3090_v41  ;;  %1862 = vmatprep.subr.bf16.mxu1 %v3101_v44  ;;  %v3182_v41 = vld [vmem:[#allocation5 + $0x6c4] ss:$16 sps:$4 sm:$0xff]   ;;  %v3183_v44 = vld [vmem:[#allocation5 + $0x2c8] ss:$16 sps:$4 sm:$0xff]  }
  0x97   :  { %1776 = vmatprep.subr.bf16.mxu0 %v3098_v43  ;;  %v3180_v43 = vld [vmem:[#allocation5 + $0x6c0] ss:$16 sps:$4 sm:$0xff]  }
  0x99   :  { %1863 = vmatpush1.bf16.msra.mxu1 %v3099_v46  ;;  %v3191_v46 = vld [vmem:[#allocation5 + $0x2ec] ss:$16 sps:$4 sm:$0xff]  }
  0x9a   :  { %1777 = vmatpush1.bf16.msra.mxu0 %v3096_v45  ;;  %1864 = vmatprep.subr.bf16.mxu1 %v3107_v48  ;;  %v3188_v45 = vld [vmem:[#allocation5 + $0x6e4] ss:$16 sps:$4 sm:$0xff]   ;;  %v3189_v48 = vld [vmem:[#allocation5 + $0x2e8] ss:$16 sps:$4 sm:$0xff]  }
  0x9b   :  { %1778 = vmatprep.subr.bf16.mxu0 %v3104_v47  ;;  %v3186_v47 = vld [vmem:[#allocation5 + $0x6e0] ss:$16 sps:$4 sm:$0xff]  }
  0x9d   :  { %1865 = vmatpush1.bf16.msra.mxu1 %v3105_v50  ;;  %v3197_v50 = vld [vmem:[#allocation5 + $0x30c] ss:$16 sps:$4 sm:$0xff]  }
  0x9e   :  { %1779 = vmatpush1.bf16.msra.mxu0 %v3102_v49  ;;  %1866 = vmatprep.subr.bf16.mxu1 %v3113_v52  ;;  %v3194_v49 = vld [vmem:[#allocation5 + $0x704] ss:$16 sps:$4 sm:$0xff]   ;;  %v3195_v52 = vld [vmem:[#allocation5 + $0x308] ss:$16 sps:$4 sm:$0xff]  }
  0x9f   :  { %1780 = vmatprep.subr.bf16.mxu0 %v3110_v51  ;;  %v3192_v51 = vld [vmem:[#allocation5 + $0x700] ss:$16 sps:$4 sm:$0xff]  }
  0xa1   :  { %1867 = vmatpush1.bf16.msra.mxu1 %v3111_v54  ;;  %v3203_v54 = vld [vmem:[#allocation5 + $0x32c] ss:$16 sps:$4 sm:$0xff]  }
  0xa2   :  { %1781 = vmatpush1.bf16.msra.mxu0 %v3108_v53  ;;  %1868 = vmatprep.subr.bf16.mxu1 %v3119_v57  ;;  %v3200_v53 = vld [vmem:[#allocation5 + $0x724] ss:$16 sps:$4 sm:$0xff]   ;;  %v3201_v57 = vld [vmem:[#allocation5 + $0x328] ss:$16 sps:$4 sm:$0xff]  }
  0xa3   :  { %1782 = vmatprep.subr.bf16.mxu0 %v3116_v56  ;;  %v3198_v56 = vld [vmem:[#allocation5 + $0x720] ss:$16 sps:$4 sm:$0xff]  }
  0xa5   :  { %1869 = vmatpush1.bf16.msra.mxu1 %v3117_v59  ;;  %v3209_v59 = vld [vmem:[#allocation5 + $0x34c] ss:$16 sps:$4 sm:$0xff]  }
  0xa6   :  { %1783 = vmatpush1.bf16.msra.mxu0 %v3114_v58  ;;  %1870 = vmatprep.subr.bf16.mxu1 %v3125_v61  ;;  %v3206_v58 = vld [vmem:[#allocation5 + $0x744] ss:$16 sps:$4 sm:$0xff]   ;;  %v3207_v61 = vld [vmem:[#allocation5 + $0x348] ss:$16 sps:$4 sm:$0xff]  }
  0xa7   :  { %1784 = vmatprep.subr.bf16.mxu0 %v3122_v60  ;;  %v3204_v60 = vld [vmem:[#allocation5 + $0x740] ss:$16 sps:$4 sm:$0xff]  }
  0xa9   :  { %1871 = vmatpush1.bf16.msra.mxu1 %v3123_v63  ;;  %v3215_v63 = vld [vmem:[#allocation5 + $0x36c] ss:$16 sps:$4 sm:$0xff]  }
  0xaa   :  { %1785 = vmatpush1.bf16.msra.mxu0 %v3120_v62  ;;  %1872 = vmatprep.subr.bf16.mxu1 %v3131_v1  ;;  %v3212_v62 = vld [vmem:[#allocation5 + $0x764] ss:$16 sps:$4 sm:$0xff]   ;;  %v3213_v1 = vld [vmem:[#allocation5 + $0x368] ss:$16 sps:$4 sm:$0xff]  }
  0xab   :  { %1786 = vmatprep.subr.bf16.mxu0 %v3128_v0  ;;  %v3210_v0 = vld [vmem:[#allocation5 + $0x760] ss:$16 sps:$4 sm:$0xff]  }
  0xad   :  { %1873 = vmatpush1.bf16.msra.mxu1 %v3129_v3  ;;  %v3221_v3 = vld [vmem:[#allocation5 + $0x38c] ss:$16 sps:$4 sm:$0xff]  }
  0xae   :  { %1787 = vmatpush1.bf16.msra.mxu0 %v3126_v2  ;;  %1874 = vmatprep.subr.bf16.mxu1 %v3137_v5  ;;  %v3218_v2 = vld [vmem:[#allocation5 + $0x784] ss:$16 sps:$4 sm:$0xff]   ;;  %v3219_v5 = vld [vmem:[#allocation5 + $0x388] ss:$16 sps:$4 sm:$0xff]  }
  0xaf   :  { %1788 = vmatprep.subr.bf16.mxu0 %v3134_v4  ;;  %v3216_v4 = vld [vmem:[#allocation5 + $0x780] ss:$16 sps:$4 sm:$0xff]  }
  0xb1   :  { %1875 = vmatpush1.bf16.msra.mxu1 %v3135_v7  ;;  %v3227_v7 = vld [vmem:[#allocation5 + $0x3ac] ss:$16 sps:$4 sm:$0xff]  }
  0xb2   :  { %1789 = vmatpush1.bf16.msra.mxu0 %v3132_v6  ;;  %1876 = vmatprep.subr.bf16.mxu1 %v3143_v11  ;;  %v3224_v6 = vld [vmem:[#allocation5 + $0x7a4] ss:$16 sps:$4 sm:$0xff]   ;;  %v3225_v11 = vld [vmem:[#allocation5 + $0x3a8] ss:$16 sps:$4 sm:$0xff]  }
  0xb3   :  { %1790 = vmatprep.subr.bf16.mxu0 %v3140_v10  ;;  %v3222_v10 = vld [vmem:[#allocation5 + $0x7a0] ss:$16 sps:$4 sm:$0xff]  }
  0xb5   :  { %1877 = vmatpush1.bf16.msra.mxu1 %v3141_v13  ;;  %v3233_v13 = vld [vmem:[#allocation5 + $0x3cc] ss:$16 sps:$4 sm:$0xff]  }
  0xb6   :  { %1791 = vmatpush1.bf16.msra.mxu0 %v3138_v12  ;;  %1889 = vmatprep.subr.bf16.mxu1 %v3149_v15  ;;  %v3230_v12 = vld [vmem:[#allocation5 + $0x7c4] ss:$16 sps:$4 sm:$0xff]   ;;  %v3231_v15 = vld [vmem:[#allocation5 + $0x3c8] ss:$16 sps:$4 sm:$0xff]  }
  0xb7   :  { %1803 = vmatprep.subr.bf16.mxu0 %v3146_v14  ;;  %v3228_v14 = vld [vmem:[#allocation5 + $0x7c0] ss:$16 sps:$4 sm:$0xff]  }
  0xb8   :  { %1879 = vmatmul.mubr.bf16.vlgmr.msra.gmra.mrb[4].mxu1 %v3590_v8  ;;  %v3164_v8 = vld [vmem:[#allocation5 + $0x664] ss:$16 sps:$4 sm:$0xff]  }
  0xb9   :  { %1793 = vmatmul.mubr.bf16.vlgmr.msra.gmra.mrb[0].mxu0 %v3607_v16  ;;  %1890 = vmatpush1.bf16.msra.mxu1 %v3147_v18  ;;  %v3239_v18 = vld [vmem:[#allocation5 + $0x3ec] ss:$16 sps:$4 sm:$0xff]  }
  0xba   :  { %1804 = vmatpush1.bf16.msra.mxu0 %v3144_v17  ;;  %1891 = vmatprep.subr.bf16.mxu1 %v3155_v20  ;;  %v3236_v17 = vld [vmem:[#allocation5 + $0x7e4] ss:$16 sps:$4 sm:$0xff]   ;;  %v3237_v20 = vld [vmem:[#allocation5 + $0x3e8] ss:$16 sps:$4 sm:$0xff]  }
  0xbb   :  { %1805 = vmatprep.subr.bf16.mxu0 %v3152_v19  ;;  %1835 = vmatprep.mubr.bf16.mxu0 %v3617_v25  ;;  %v3234_v19 = vld [vmem:[#allocation5 + $0x7e0] ss:$16 sps:$4 sm:$0xff]  }
  0xbc   :  { %1921 = vmatprep.mubr.bf16.mxu1 %v3587_v55  ;;  %v3176_v55 = vld [vmem:[#allocation5 + $0x6a4] ss:$16 sps:$4 sm:$0xff]  }
  0xbd   :  { %1892 = vmatpush1.bf16.msra.mxu1 %v3153_v24  ;;  %v3240_v24 = vld [vmem:[#allocation5 + $0x408] ss:$16 sps:$4 sm:$0xff]  }
  0xbe   :  { %1806 = vmatpush1.bf16.msra.mxu0 %v3150_v23  ;;  %1893 = vmatprep.subr.bf16.mxu1 %v3161_v27  ;;  %v3242_v23 = vld [vmem:[#allocation5 + $0x40c] ss:$16 sps:$4 sm:$0xff]  }
  0xbf   :  { %1807 = vmatprep.subr.bf16.mxu0 %v3158_v26  ;;  %v3623_v26 = vcombine.low %v3609_v21, %v3611_v22  ;;  %v3245_v27 = vld [vmem:[#allocation5 + $0x42c] ss:$16 sps:$4 sm:$0xff]   ;;  %v3339_v21 = vld [vmem:[#allocation7 + $0x10] ss:$8 sps:$4 sm:$0xff]  }
  0xc0   :  { %v3344_v22 = vld [vmem:[#allocation7 + $0x24] ss:$8 sps:$4 sm:$0xff]  }
  0xc1   :  { %1894 = vmatpush1.bf16.msra.mxu1 %v3159_v29  ;;  %v3338_v29 = vld [vmem:[#allocation7 + $0x4] ss:$8 sps:$4 sm:$0xff]  }
  0xc2   :  { %1808 = vmatpush1.bf16.msra.mxu0 %v3156_v28  ;;  %1895 = vmatprep.subr.bf16.mxu1 %v3167_v30  ;;  %v3336_v28 = vld [vmem:[#allocation7] ss:$8 sps:$4 sm:$0xff]   ;;  %v3341_v30 = vld [vmem:[#allocation7 + $0x14] ss:$8 sps:$4 sm:$0xff]  }
  0xc3   :  { %1809 = vmatprep.subr.bf16.mxu0 %v3164_v8  ;;  %v3243_v8 = vld [vmem:[#allocation5 + $0x428] ss:$16 sps:$4 sm:$0xff]  }
  0xc5   :  { %1896 = vmatpush1.bf16.msra.mxu1 %v3165_v32  ;;  %v3246_v32 = vld [vmem:[#allocation5 + $0x448] ss:$16 sps:$4 sm:$0xff]  }
  0xc6   :  { %1810 = vmatpush1.bf16.msra.mxu0 %v3162_v31  ;;  %1897 = vmatprep.subr.bf16.mxu1 %v3173_v34  ;;  %v3248_v31 = vld [vmem:[#allocation5 + $0x44c] ss:$16 sps:$4 sm:$0xff]  }
  0xc7   :  { %1811 = vmatprep.subr.bf16.mxu0 %v3170_v33  ;;  %v3251_v33 = vld [vmem:[#allocation5 + $0x46c] ss:$16 sps:$4 sm:$0xff]  }
  0xc8   :  { %v3347_v34 = vld [vmem:[#allocation7 + $0x34] ss:$8 sps:$4 sm:$0xff]  }
  0xc9   :  { %1898 = vmatpush1.bf16.msra.mxu1 %v3171_v36  ;;  %v3345_v36 = vld [vmem:[#allocation7 + $0x30] ss:$8 sps:$4 sm:$0xff]  }
  0xca   :  { %1812 = vmatpush1.bf16.msra.mxu0 %v3168_v35  ;;  %1899 = vmatprep.subr.bf16.mxu1 %v3179_v37  ;;  %v3249_v35 = vld [vmem:[#allocation5 + $0x468] ss:$16 sps:$4 sm:$0xff]  }
  0xcb   :  { %1813 = vmatprep.subr.bf16.mxu0 %v3176_v55  ;;  %v3350_v55 = vld [vmem:[#allocation7 + $0x44] ss:$8 sps:$4 sm:$0xff]   ;;  %v3252_v37 = vld [vmem:[#allocation5 + $0x488] ss:$16 sps:$4 sm:$0xff]  }
  0xcd   :  { %1900 = vmatpush1.bf16.msra.mxu1 %v3177_v40  ;;  %v3348_v40 = vld [vmem:[#allocation7 + $0x40] ss:$8 sps:$4 sm:$0xff]  }
  0xce   :  { %1814 = vmatpush1.bf16.msra.mxu0 %v3174_v39  ;;  %1901 = vmatprep.subr.bf16.mxu1 %v3185_v42  ;;  %v3257_v39 = vld [vmem:[#allocation5 + $0x4ac] ss:$16 sps:$4 sm:$0xff]   ;;  %v3255_v42 = vld [vmem:[#allocation5 + $0x4a8] ss:$16 sps:$4 sm:$0xff]  }
  0xcf   :  { %1815 = vmatprep.subr.bf16.mxu0 %v3182_v41  ;;  %v3353_v41 = vld [vmem:[#allocation7 + $0x54] ss:$8 sps:$4 sm:$0xff]  }
  0xd1   :  { %1902 = vmatpush1.bf16.msra.mxu1 %v3183_v44  ;;  %v3351_v44 = vld [vmem:[#allocation7 + $0x50] ss:$8 sps:$4 sm:$0xff]  }
  0xd2   :  { %1816 = vmatpush1.bf16.msra.mxu0 %v3180_v43  ;;  %1903 = vmatprep.subr.bf16.mxu1 %v3191_v46  ;;  %v3260_v43 = vld [vmem:[#allocation5 + $0x4cc] ss:$16 sps:$4 sm:$0xff]   ;;  %v3258_v46 = vld [vmem:[#allocation5 + $0x4c8] ss:$16 sps:$4 sm:$0xff]  }
  0xd3   :  { %1817 = vmatprep.subr.bf16.mxu0 %v3188_v45  ;;  %v3356_v45 = vld [vmem:[#allocation7 + $0x64] ss:$8 sps:$4 sm:$0xff]  }
  0xd5   :  { %1904 = vmatpush1.bf16.msra.mxu1 %v3189_v48  ;;  %v3354_v48 = vld [vmem:[#allocation7 + $0x60] ss:$8 sps:$4 sm:$0xff]  }
  0xd6   :  { %1818 = vmatpush1.bf16.msra.mxu0 %v3186_v47  ;;  %1905 = vmatprep.subr.bf16.mxu1 %v3197_v50  ;;  %v3263_v47 = vld [vmem:[#allocation5 + $0x4ec] ss:$16 sps:$4 sm:$0xff]   ;;  %v3261_v50 = vld [vmem:[#allocation5 + $0x4e8] ss:$16 sps:$4 sm:$0xff]  }
  0xd7   :  { %1819 = vmatprep.subr.bf16.mxu0 %v3194_v49  ;;  %v3359_v49 = vld [vmem:[#allocation7 + $0x74] ss:$8 sps:$4 sm:$0xff]  }
  0xd9   :  { %1906 = vmatpush1.bf16.msra.mxu1 %v3195_v52  ;;  %v3357_v52 = vld [vmem:[#allocation7 + $0x70] ss:$8 sps:$4 sm:$0xff]  }
  0xda   :  { %1820 = vmatpush1.bf16.msra.mxu0 %v3192_v51  ;;  %1907 = vmatprep.subr.bf16.mxu1 %v3203_v54  ;;  %v3266_v51 = vld [vmem:[#allocation5 + $0x50c] ss:$16 sps:$4 sm:$0xff]   ;;  %v3264_v54 = vld [vmem:[#allocation5 + $0x508] ss:$16 sps:$4 sm:$0xff]  }
  0xdb   :  { %1821 = vmatprep.subr.bf16.mxu0 %v3200_v53  ;;  %v3362_v53 = vld [vmem:[#allocation7 + $0x84] ss:$8 sps:$4 sm:$0xff]  }
  0xdd   :  { %1908 = vmatpush1.bf16.msra.mxu1 %v3201_v57  ;;  %v3360_v57 = vld [vmem:[#allocation7 + $0x80] ss:$8 sps:$4 sm:$0xff]  }
  0xde   :  { %1822 = vmatpush1.bf16.msra.mxu0 %v3198_v56  ;;  %1909 = vmatprep.subr.bf16.mxu1 %v3209_v59  ;;  %v3269_v56 = vld [vmem:[#allocation5 + $0x52c] ss:$16 sps:$4 sm:$0xff]   ;;  %v3267_v59 = vld [vmem:[#allocation5 + $0x528] ss:$16 sps:$4 sm:$0xff]  }
  0xdf   :  { %1823 = vmatprep.subr.bf16.mxu0 %v3206_v58  ;;  %v3365_v58 = vld [vmem:[#allocation7 + $0x94] ss:$8 sps:$4 sm:$0xff]  }
  0xe1   :  { %1910 = vmatpush1.bf16.msra.mxu1 %v3207_v61  ;;  %v3363_v61 = vld [vmem:[#allocation7 + $0x90] ss:$8 sps:$4 sm:$0xff]  }
  0xe2   :  { %1824 = vmatpush1.bf16.msra.mxu0 %v3204_v60  ;;  %1911 = vmatprep.subr.bf16.mxu1 %v3215_v63  ;;  %v3272_v60 = vld [vmem:[#allocation5 + $0x54c] ss:$16 sps:$4 sm:$0xff]   ;;  %v3270_v63 = vld [vmem:[#allocation5 + $0x548] ss:$16 sps:$4 sm:$0xff]  }
  0xe3   :  { %1825 = vmatprep.subr.bf16.mxu0 %v3212_v62  ;;  %v3368_v62 = vld [vmem:[#allocation7 + $0xa4] ss:$8 sps:$4 sm:$0xff]  }
  0xe5   :  { %1912 = vmatpush1.bf16.msra.mxu1 %v3213_v1  ;;  %v3366_v1 = vld [vmem:[#allocation7 + $0xa0] ss:$8 sps:$4 sm:$0xff]  }
  0xe6   :  { %1826 = vmatpush1.bf16.msra.mxu0 %v3210_v0  ;;  %1913 = vmatprep.subr.bf16.mxu1 %v3221_v3  ;;  %v3275_v0 = vld [vmem:[#allocation5 + $0x56c] ss:$16 sps:$4 sm:$0xff]   ;;  %v3273_v3 = vld [vmem:[#allocation5 + $0x568] ss:$16 sps:$4 sm:$0xff]  }
  0xe7   :  { %1827 = vmatprep.subr.bf16.mxu0 %v3218_v2  ;;  %v3371_v2 = vld [vmem:[#allocation7 + $0xb4] ss:$8 sps:$4 sm:$0xff]  }
  0xe9   :  { %1914 = vmatpush1.bf16.msra.mxu1 %v3219_v5  ;;  %v3369_v5 = vld [vmem:[#allocation7 + $0xb0] ss:$8 sps:$4 sm:$0xff]  }
  0xea   :  { %1828 = vmatpush1.bf16.msra.mxu0 %v3216_v4  ;;  %1915 = vmatprep.subr.bf16.mxu1 %v3227_v7  ;;  %v3278_v4 = vld [vmem:[#allocation5 + $0x58c] ss:$16 sps:$4 sm:$0xff]   ;;  %v3276_v7 = vld [vmem:[#allocation5 + $0x588] ss:$16 sps:$4 sm:$0xff]  }
  0xeb   :  { %1829 = vmatprep.subr.bf16.mxu0 %v3224_v6  ;;  %v3374_v6 = vld [vmem:[#allocation7 + $0xc4] ss:$8 sps:$4 sm:$0xff]  }
  0xed   :  { %1916 = vmatpush1.bf16.msra.mxu1 %v3225_v11  ;;  %v3372_v11 = vld [vmem:[#allocation7 + $0xc0] ss:$8 sps:$4 sm:$0xff]  }
  0xee   :  { %1830 = vmatpush1.bf16.msra.mxu0 %v3222_v10  ;;  %1917 = vmatprep.subr.bf16.mxu1 %v3233_v13  ;;  %v3281_v10 = vld [vmem:[#allocation5 + $0x5ac] ss:$16 sps:$4 sm:$0xff]  }
  0xef   :  { %1831 = vmatprep.subr.bf16.mxu0 %v3230_v12  ;;  %v3279_v12 = vld [vmem:[#allocation5 + $0x5a8] ss:$16 sps:$4 sm:$0xff]   ;;  %v3284_v13 = vld [vmem:[#allocation5 + $0x5cc] ss:$16 sps:$4 sm:$0xff]  }
  0xf1   :  { %1918 = vmatpush1.bf16.msra.mxu1 %v3231_v15  ;;  %v3287_v15 = vld [vmem:[#allocation5 + $0x5ec] ss:$16 sps:$4 sm:$0xff]  }
  0xf2   :  { %1832 = vmatpush1.bf16.msra.mxu0 %v3228_v14  ;;  %1919 = vmatprep.subr.bf16.mxu1 %v3239_v18  ;;  %v3282_v14 = vld [vmem:[#allocation5 + $0x5c8] ss:$16 sps:$4 sm:$0xff]   ;;  %v3290_v18 = vld [vmem:[#allocation5 + $0x60c] ss:$16 sps:$4 sm:$0xff]  }
  0xf3   :  { %1833 = vmatprep.subr.bf16.mxu0 %v3236_v17  ;;  %v3285_v17 = vld [vmem:[#allocation5 + $0x5e8] ss:$16 sps:$4 sm:$0xff]  }
  0xf5   :  { %1920 = vmatpush1.bf16.msra.mxu1 %v3237_v20  ;;  %v3293_v20 = vld [vmem:[#allocation5 + $0x62c] ss:$16 sps:$4 sm:$0xff]  }
  0xf6   :  { %1834 = vmatpush1.bf16.msra.mxu0 %v3234_v19  ;;  %1932 = vmatprep.subr.bf16.mxu1 %v3242_v23  ;;  %v3288_v19 = vld [vmem:[#allocation5 + $0x608] ss:$16 sps:$4 sm:$0xff]  }
  0xf7   :  { %2442 = vmatprep.subr.bf16.mxu0 %v3338_v29  ;;  %v3291_v23 = vld [vmem:[#allocation5 + $0x628] ss:$16 sps:$4 sm:$0xff]  }
  0xf8   :  { %1922 = vmatmul.mubr.bf16.vlgmr.msra.gmra.mrb[4].mxu1 %v3592_v9  ;;  %v3342_v9 = vld [vmem:[#allocation7 + $0x20] ss:$8 sps:$4 sm:$0xff]  }
  0xf9   :  { %1836 = vmatmul.mubr.bf16.vlgmr.msra.gmra.mrb[0].mxu0 %v3623_v26  ;;  %1933 = vmatpush1.bf16.msra.mxu1 %v3240_v24  ;;  %v3296_v24 = vld [vmem:[#allocation5 + $0x64c] ss:$16 sps:$4 sm:$0xff]   ;;  %v3297_v29 = vld [vmem:[#allocation5 + $0x668] ss:$16 sps:$4 sm:$0xff]  }
  0xfa   :  { %1964 = vmatprep.mubr.bf16.mxu1 %v3602_v38  ;;  %1934 = vmatprep.subr.bf16.mxu1 %v3245_v27  ;;  %v3254_v38 = vld [vmem:[#allocation5 + $0x48c] ss:$16 sps:$4 sm:$0xff]   ;;  %v3294_v27 = vld [vmem:[#allocation5 + $0x648] ss:$16 sps:$4 sm:$0xff]  }
  0xfb   :  { %2443 = vmatpush1.bf16.msra.mxu0 %v3336_v28  ;;  %v3299_v28 = vld [vmem:[#allocation5 + $0x66c] ss:$16 sps:$4 sm:$0xff]  }
  0xfc   :  { %2444 = vmatprep.subr.bf16.mxu0 %v3341_v30  ;;  %v3300_v30 = vld [vmem:[#allocation5 + $0x688] ss:$16 sps:$4 sm:$0xff]  }
  0xfd   :  { %1935 = vmatpush1.bf16.msra.mxu1 %v3243_v8  ;;  %v3302_v8 = vld [vmem:[#allocation5 + $0x68c] ss:$16 sps:$4 sm:$0xff]  }
  0xfe   :  { %1936 = vmatprep.subr.bf16.mxu1 %v3248_v31  ;;  %v3305_v31 = vld [vmem:[#allocation5 + $0x6ac] ss:$16 sps:$4 sm:$0xff]  }
  0xff   :  { %2445 = vmatpush1.bf16.msra.mxu0 %v3339_v21  ;;  %v3377_v21 = vld [vmem:[#allocation7 + $0xd4] ss:$8 sps:$4 sm:$0xff]  }
 0x100   :  { %2446 = vmatprep.subr.bf16.mxu0 %v3344_v22  ;;  %v3308_v22 = vld [vmem:[#allocation5 + $0x6cc] ss:$16 sps:$4 sm:$0xff]  }
 0x101   :  { %1937 = vmatpush1.bf16.msra.mxu1 %v3246_v32 }
 0x102   :  { %1938 = vmatprep.subr.bf16.mxu1 %v3251_v33 }
 0x103   :  { %2447 = vmatpush1.bf16.msra.mxu0 %v3342_v9 }
 0x104   :  { %2448 = vmatprep.subr.bf16.mxu0 %v3347_v34  ;;  %v3306_v34 = vld [vmem:[#allocation5 + $0x6c8] ss:$16 sps:$4 sm:$0xff]  }
 0x105   :  { %1939 = vmatpush1.bf16.msra.mxu1 %v3249_v35  ;;  %v3380_v35 = vld [vmem:[#allocation7 + $0xe4] ss:$8 sps:$4 sm:$0xff]  }
 0x106   :  { %1940 = vmatprep.subr.bf16.mxu1 %v3254_v38 }
 0x107   :  { %2449 = vmatpush1.bf16.msra.mxu0 %v3345_v36  ;;  %v3311_v36 = vld [vmem:[#allocation5 + $0x6ec] ss:$16 sps:$4 sm:$0xff]  }
 0x108   :  { %2450 = vmatprep.subr.bf16.mxu0 %v3350_v55  ;;  %v3378_v55 = vld [vmem:[#allocation7 + $0xe0] ss:$8 sps:$4 sm:$0xff]  }
 0x109   :  { %1941 = vmatpush1.bf16.msra.mxu1 %v3252_v37  ;;  %v3309_v37 = vld [vmem:[#allocation5 + $0x6e8] ss:$16 sps:$4 sm:$0xff]  }
 0x10a   :  { %1942 = vmatprep.subr.bf16.mxu1 %v3257_v39  ;;  %v3383_v39 = vld [vmem:[#allocation7 + $0xf4] ss:$8 sps:$4 sm:$0xff]  }
 0x10b   :  { %2451 = vmatpush1.bf16.msra.mxu0 %v3348_v40  ;;  %v3314_v40 = vld [vmem:[#allocation5 + $0x70c] ss:$16 sps:$4 sm:$0xff]  }
 0x10c   :  { %2452 = vmatprep.subr.bf16.mxu0 %v3353_v41  ;;  %v3381_v41 = vld [vmem:[#allocation7 + $0xf0] ss:$8 sps:$4 sm:$0xff]  }
 0x10d   :  { %1943 = vmatpush1.bf16.msra.mxu1 %v3255_v42  ;;  %v3312_v42 = vld [vmem:[#allocation5 + $0x708] ss:$16 sps:$4 sm:$0xff]  }
 0x10e   :  { %1944 = vmatprep.subr.bf16.mxu1 %v3260_v43  ;;  %v3317_v43 = vld [vmem:[#allocation5 + $0x72c] ss:$16 sps:$4 sm:$0xff]  }
 0x10f   :  { %2453 = vmatpush1.bf16.msra.mxu0 %v3351_v44  ;;  %v3386_v44 = vld [vmem:[#allocation7 + $0x104] ss:$8 sps:$4 sm:$0xff]  }
 0x110   :  { %2454 = vmatprep.subr.bf16.mxu0 %v3356_v45  ;;  %v3315_v45 = vld [vmem:[#allocation5 + $0x728] ss:$16 sps:$4 sm:$0xff]  }
 0x111   :  { %1945 = vmatpush1.bf16.msra.mxu1 %v3258_v46  ;;  %v3320_v46 = vld [vmem:[#allocation5 + $0x74c] ss:$16 sps:$4 sm:$0xff]  }
 0x112   :  { %1946 = vmatprep.subr.bf16.mxu1 %v3263_v47  ;;  %v3318_v47 = vld [vmem:[#allocation5 + $0x748] ss:$16 sps:$4 sm:$0xff]  }
 0x113   :  { %2455 = vmatpush1.bf16.msra.mxu0 %v3354_v48  ;;  %v3323_v48 = vld [vmem:[#allocation5 + $0x76c] ss:$16 sps:$4 sm:$0xff]  }
 0x114   :  { %2456 = vmatprep.subr.bf16.mxu0 %v3359_v49  ;;  %v3321_v49 = vld [vmem:[#allocation5 + $0x768] ss:$16 sps:$4 sm:$0xff]  }
 0x115   :  { %1947 = vmatpush1.bf16.msra.mxu1 %v3261_v50  ;;  %v3326_v50 = vld [vmem:[#allocation5 + $0x78c] ss:$16 sps:$4 sm:$0xff]  }
 0x116   :  { %1948 = vmatprep.subr.bf16.mxu1 %v3266_v51  ;;  %v3324_v51 = vld [vmem:[#allocation5 + $0x788] ss:$16 sps:$4 sm:$0xff]  }
 0x117   :  { %2457 = vmatpush1.bf16.msra.mxu0 %v3357_v52  ;;  %v3329_v52 = vld [vmem:[#allocation5 + $0x7ac] ss:$16 sps:$4 sm:$0xff]  }
 0x118   :  { %2458 = vmatprep.subr.bf16.mxu0 %v3362_v53  ;;  %v3327_v53 = vld [vmem:[#allocation5 + $0x7a8] ss:$16 sps:$4 sm:$0xff]  }
 0x119   :  { %1949 = vmatpush1.bf16.msra.mxu1 %v3264_v54  ;;  %v3332_v54 = vld [vmem:[#allocation5 + $0x7cc] ss:$16 sps:$4 sm:$0xff]  }
 0x11a   :  { %1950 = vmatprep.subr.bf16.mxu1 %v3269_v56  ;;  %v3330_v56 = vld [vmem:[#allocation5 + $0x7c8] ss:$16 sps:$4 sm:$0xff]  }
 0x11b   :  { %2459 = vmatpush1.bf16.msra.mxu0 %v3360_v57  ;;  %v3335_v57 = vld [vmem:[#allocation5 + $0x7ec] ss:$16 sps:$4 sm:$0xff]  }
 0x11c   :  { %2460 = vmatprep.subr.bf16.mxu0 %v3365_v58  ;;  %v3333_v58 = vld [vmem:[#allocation5 + $0x7e8] ss:$16 sps:$4 sm:$0xff]  }
 0x11d   :  { %1951 = vmatpush1.bf16.msra.mxu1 %v3267_v59  ;;  %v334_v59 = vlaneseq }
 0x11e   :  { %1952 = vmatprep.subr.bf16.mxu1 %v3272_v60 }
 0x11f   :  { %2461 = vmatpush1.bf16.msra.mxu0 %v3363_v61  ;;  %v3637_v60 = vshrl.u32 %v334_v59, 7 }
 0x120   :  { %2462 = vmatprep.subr.bf16.mxu0 %v3368_v62  ;;  %v3645_v62 = vld [vmem:[%s3682_s2] sm:$0xf] }
 0x121   :  { %1953 = vmatpush1.bf16.msra.mxu1 %v3270_v63  ;;  %v3640_v61 = vsub.s32 0, %v3637_v60  ;;  %v3648_v63 = vsub.s32 1, %v3637_v60 }
 0x122   :  { %1954 = vmatprep.subr.bf16.mxu1 %v3275_v0 }
 0x123   :  { %2463 = vmatpush1.bf16.msra.mxu0 %v3366_v1  ;;  %v337_v0 = vrot.slane %v3645_v62, %v3640_v61 }
 0x124   :  { %2464 = vmatprep.subr.bf16.mxu0 %v3371_v2 }
 0x125   :  { %1955 = vmatpush1.bf16.msra.mxu1 %v3273_v3 }
 0x126   :  { %1956 = vmatprep.subr.bf16.mxu1 %v3278_v4 }
 0x127   :  { %2465 = vmatpush1.bf16.msra.mxu0 %v3369_v5 }
 0x128   :  { %2466 = vmatprep.subr.bf16.mxu0 %v3374_v6 }
 0x129   :  { %1957 = vmatpush1.bf16.msra.mxu1 %v3276_v7 }
 0x12a   :  { %1958 = vmatprep.subr.bf16.mxu1 %v3281_v10 }
 0x12b   :  { %2467 = vmatpush1.bf16.msra.mxu0 %v3372_v11 }
 0x12c   :  { %2468 = vmatprep.subr.bf16.mxu0 %v3377_v21  ;;  %v3390_v21 = vld [vmem:[#allocation7 + $0x120] ss:$8 sps:$4 sm:$0xff]  }
 0x12d   :  { %1959 = vmatpush1.bf16.msra.mxu1 %v3279_v12 }
 0x12e   :  { %1960 = vmatprep.subr.bf16.mxu1 %v3284_v13 }
 0x131   :  { %1961 = vmatpush1.bf16.msra.mxu1 %v3282_v14 }
 0x132   :  { %1962 = vmatprep.subr.bf16.mxu1 %v3287_v15 }
 0x135   :  { %1963 = vmatpush1.bf16.msra.mxu1 %v3285_v17 }
 0x136   :  { %1975 = vmatprep.subr.bf16.mxu1 %v3290_v18 }
 0x138   :  { %1965 = vmatmul.mubr.bf16.vlgmr.msra.gmra.mrb[4].mxu1 %v3607_v16  ;;  %v3303_v16 = vld [vmem:[#allocation5 + $0x6a8] ss:$16 sps:$4 sm:$0xff]  }
 0x139   :  { %1976 = vmatpush1.bf16.msra.mxu1 %v3288_v19  ;;  %2007 = vmatprep.mubr.bf16.mxu1 %v3617_v25  ;;  %v3375_v25 = vld [vmem:[#allocation7 + $0xd0] ss:$8 sps:$4 sm:$0xff]  }
 0x13a   :  { %1977 = vmatprep.subr.bf16.mxu1 %v3293_v20  ;;  %2469 = vmatpush1.bf16.msra.mxu0 %v3375_v25  ;;  %v3393_v25 = vld [vmem:[#allocation7 + $0x130] ss:$8 sps:$4 sm:$0xff]  }
 0x13b   :  { %2470 = vmatprep.subr.bf16.mxu0 %v3380_v35  ;;  %v3404_v35 = vld [vmem:[#allocation7 + $0x164] ss:$8 sps:$4 sm:$0xff]  }
 0x13d   :  { %1978 = vmatpush1.bf16.msra.mxu1 %v3291_v23 }
 0x13e   :  { %1979 = vmatprep.subr.bf16.mxu1 %v3296_v24  ;;  %2471 = vmatpush1.bf16.msra.mxu0 %v3378_v55  ;;  %v3405_v55 = vld [vmem:[#allocation7 + $0x170] ss:$8 sps:$4 sm:$0xff]  }
 0x13f   :  { %2472 = vmatprep.subr.bf16.mxu0 %v3383_v39  ;;  %v3408_v39 = vld [vmem:[#allocation7 + $0x180] ss:$8 sps:$4 sm:$0xff]  }
 0x141   :  { %1980 = vmatpush1.bf16.msra.mxu1 %v3294_v27 }
 0x142   :  { %1981 = vmatprep.subr.bf16.mxu1 %v3299_v28  ;;  %2473 = vmatpush1.bf16.msra.mxu0 %v3381_v41  ;;  %v3411_v41 = vld [vmem:[#allocation7 + $0x190] ss:$8 sps:$4 sm:$0xff]  }
 0x143   :  { %2485 = vmatprep.subr.bf16.mxu0 %v3386_v44  ;;  %v3419_v44 = vld [vmem:[#allocation7 + $0x1b4] ss:$8 sps:$4 sm:$0xff]  }
 0x145   :  { %1982 = vmatpush1.bf16.msra.mxu1 %v3297_v29 }
 0x146   :  { %1983 = vmatprep.subr.bf16.mxu1 %v3302_v8  ;;  %v3384_v8 = vld [vmem:[#allocation7 + $0x100] ss:$8 sps:$4 sm:$0xff]  }
 0x149   :  { %1984 = vmatpush1.bf16.msra.mxu1 %v3300_v30  ;;  %v3389_v30 = vld [vmem:[#allocation7 + $0x114] ss:$8 sps:$4 sm:$0xff]  }
 0x14a   :  { %1985 = vmatprep.subr.bf16.mxu1 %v3305_v31  ;;  %v3387_v31 = vld [vmem:[#allocation7 + $0x110] ss:$8 sps:$4 sm:$0xff]  }
 0x14b   :  { %v3630_v32 = vpop.f32.mrb[0].mxu1 }
 0x14c   :  { %v3632_v33 = vpop.f32.mrb[1].mxu1  ;;  %v1709_v1 = vadd.f32 %v3630_v32, %v337_v0  ;;  %v3398_v32 = vld [vmem:[#allocation7 + $0x144] ss:$8 sps:$4 sm:$0xff]  }
 0x14d   :  { %v3634_v9 = vpop.f32.mrb[2].mxu1  ;;  %1986 = vmatpush1.bf16.msra.mxu1 %v3303_v16  ;;  %v3392_v16 = vld [vmem:[#allocation7 + $0x124] ss:$8 sps:$4 sm:$0xff]  }
 0x14e   :  { %v1714_v38 = vpop.f32.mrb[3].mxu1  ;;  %1987 = vmatprep.subr.bf16.mxu1 %v3308_v22  ;;  %v1713_v4 = vadd.f32 %v3634_v9, %v337_v0  ;;  %v3395_v22 = vld [vmem:[#allocation7 + $0x134] ss:$8 sps:$4 sm:$0xff]  }
 0x14f   :  { %v3401_v9 = vld [vmem:[#allocation7 + $0x154] ss:$8 sps:$4 sm:$0xff]  }
 0x151   :  { %1988 = vmatpush1.bf16.msra.mxu1 %v3306_v34  ;;  %v3399_v34 = vld [vmem:[#allocation7 + $0x150] ss:$8 sps:$4 sm:$0xff]  }
 0x152   :  { %1989 = vmatprep.subr.bf16.mxu1 %v3311_v36  ;;  %v3407_v36 = vld [vmem:[#allocation7 + $0x174] ss:$8 sps:$4 sm:$0xff]  }
 0x155   :  { %1990 = vmatpush1.bf16.msra.mxu1 %v3309_v37  ;;  %v3410_v37 = vld [vmem:[#allocation7 + $0x184] ss:$8 sps:$4 sm:$0xff]  }
 0x156   :  { %1991 = vmatprep.subr.bf16.mxu1 %v3314_v40  ;;  %v3413_v40 = vld [vmem:[#allocation7 + $0x194] ss:$8 sps:$4 sm:$0xff]  }
 0x159   :  { %1992 = vmatpush1.bf16.msra.mxu1 %v3312_v42  ;;  %v3416_v42 = vld [vmem:[#allocation7 + $0x1a4] ss:$8 sps:$4 sm:$0xff]  }
 0x15a   :  { %1993 = vmatprep.subr.bf16.mxu1 %v3317_v43  ;;  %v3414_v43 = vld [vmem:[#allocation7 + $0x1a0] ss:$8 sps:$4 sm:$0xff]  }
 0x15d   :  { %1994 = vmatpush1.bf16.msra.mxu1 %v3315_v45  ;;  %v3417_v45 = vld [vmem:[#allocation7 + $0x1b0] ss:$8 sps:$4 sm:$0xff]  }
 0x15e   :  { %1995 = vmatprep.subr.bf16.mxu1 %v3320_v46  ;;  %v3422_v46 = vld [vmem:[#allocation7 + $0x1c4] ss:$8 sps:$4 sm:$0xff]  }
 0x161   :  { %1996 = vmatpush1.bf16.msra.mxu1 %v3318_v47  ;;  %v3420_v47 = vld [vmem:[#allocation7 + $0x1c0] ss:$8 sps:$4 sm:$0xff]  }
 0x162   :  { %1997 = vmatprep.subr.bf16.mxu1 %v3323_v48  ;;  %v3425_v48 = vld [vmem:[#allocation7 + $0x1d4] ss:$8 sps:$4 sm:$0xff]  }
 0x165   :  { %1998 = vmatpush1.bf16.msra.mxu1 %v3321_v49  ;;  %v3423_v49 = vld [vmem:[#allocation7 + $0x1d0] ss:$8 sps:$4 sm:$0xff]  }
 0x166   :  { %1999 = vmatprep.subr.bf16.mxu1 %v3326_v50  ;;  %v3428_v50 = vld [vmem:[#allocation7 + $0x1e4] ss:$8 sps:$4 sm:$0xff]  }
 0x169   :  { %2000 = vmatpush1.bf16.msra.mxu1 %v3324_v51  ;;  %v3426_v51 = vld [vmem:[#allocation7 + $0x1e0] ss:$8 sps:$4 sm:$0xff]  }
 0x16a   :  { %2001 = vmatprep.subr.bf16.mxu1 %v3329_v52  ;;  %v3431_v52 = vld [vmem:[#allocation7 + $0x1f4] ss:$8 sps:$4 sm:$0xff]  }
 0x16d   :  { %2002 = vmatpush1.bf16.msra.mxu1 %v3327_v53  ;;  %v3429_v53 = vld [vmem:[#allocation7 + $0x1f0] ss:$8 sps:$4 sm:$0xff]  }
 0x16e   :  { %2003 = vmatprep.subr.bf16.mxu1 %v3332_v54  ;;  %v344_v54 = vsub.s32 2, %v3637_v60 }
 0x171   :  { %2004 = vmatpush1.bf16.msra.mxu1 %v3330_v56  ;;  %v348_v56 = vsub.s32 3, %v3637_v60 }
 0x172   :  { %2005 = vmatprep.subr.bf16.mxu1 %v3335_v57  ;;  %v345_v57 = vrot.slane %v3645_v62, %v344_v54 }
 0x175   :  { %2006 = vmatpush1.bf16.msra.mxu1 %v3333_v58  ;;  %v349_v58 = vrot.slane %v3645_v62, %v348_v56 }
 0x178   :  { %2008 = vmatmul.mubr.bf16.vlgmr.msra.gmra.mrb[4].mxu1 %v3623_v26  ;;  %v341_v26 = vrot.slane %v3645_v62, %v3648_v63 }
 0x17a   :  { %v1711_v2 = vadd.f32 %v3632_v33, %v341_v26  ;;  %v1715_v7 = vadd.f32 %v1714_v38, %v341_v26  ;;  %v3396_v33 = vld [vmem:[#allocation7 + $0x140] ss:$8 sps:$4 sm:$0xff]  }
 0x17b   :  { %v3402_v38 = vld [vmem:[#allocation7 + $0x160] ss:$8 sps:$4 sm:$0xff]  }
 0x1cc   :  { %v1837_v3 = vpop.f32.mrb[0].mxu0 }
 0x1cd   :  { %v2904_v5 = vadd.f32 %v1837_v3, %v1709_v1  ;;  %v1839_v6 = vpop.f32.mrb[1].mxu0 }
 0x1ce   :  { %v2906_v10 = vadd.f32 %v1839_v6, %v1711_v2  ;;  %v1841_v11 = vpop.f32.mrb[2].mxu0 }
 0x1cf   :  { %v2026_v12 = vmul.f32 0.2, %v2904_v5  ;;  %v2908_v13 = vadd.f32 %v1841_v11, %v1713_v4  ;;  %v1843_v14 = vpop.f32.mrb[3].mxu0  ;;  %vm2018_vm0 = vcmp.gt.f32.partialorder %v2904_v5, 0.0 }
 0x1d0   :  { %v2027_v15 = vmul.f32 0.2, %v2906_v10  ;;  %v2910_v17 = vadd.f32 %v1843_v14, %v1715_v7  ;;  %vm2019_vm1 = vcmp.gt.f32.partialorder %v2906_v10, 0.0 }
 0x1d1   :  { %vm2022_vm2 = vcmp.gt.f32.partialorder %v2908_v13, 0.0  ;;  %v2030_v18 = vmul.f32 0.2, %v2908_v13  ;;  %v2034_v20 = vsel %vm2018_vm0, %v2904_v5, %v2026_v12 }
 0x1d2   :  { %vm2023_vm3 = vcmp.gt.f32.partialorder %v2910_v17, 0.0  ;;  %v2031_v19 = vmul.f32 0.2, %v2910_v17  ;;  %v2035_v27 = vsel %vm2019_vm1, %v2906_v10, %v2027_v15 }
 0x1d3   :  { %v2038_v23 = vsel %vm2022_vm2, %v2908_v13, %v2030_v18 }
 0x1d4   :  { %v2042_v24 = vpack.c.bf16 %v2038_v23, %v2034_v20  ;;  %v2039_v28 = vsel %vm2023_vm3, %v2910_v17, %v2031_v19  ;;  %v2110_v17 = vld [vmem:[%s3684_s4] sm:$0x3] }
 0x1d5   :  { %v2043_v29 = vpack.c.bf16 %v2039_v28, %v2035_v27  ;;  %v2115_v18 = vrot.slane %v2110_v17, %v3640_v61  ;;  %v2119_v19 = vrot.slane %v2110_v17, %v3648_v63  ;;  %v2540_v20 = vld [vmem:[%s3685_s5] sm:$0x3] }
 0x1d7   :  { %2474 = vmatprep.mubr.bf16.mxu0 %v2043_v29 }
 0x1d8   :  { %2475 = vmatmul.mubr.bf16.vlgmr.msra.gmra.mrb[4].mxu0 %v2042_v24 }
 0x1d9   :  { %2486 = vmatpush1.bf16.msra.mxu0 %v3384_v8  ;;  %v2545_v8 = vrot.slane %v2540_v20, %v3640_v61 }
 0x1da   :  { %2487 = vmatprep.subr.bf16.mxu0 %v3389_v30 }
 0x1dd   :  { %2488 = vmatpush1.bf16.msra.mxu0 %v3387_v31 }
 0x1de   :  { %2489 = vmatprep.subr.bf16.mxu0 %v3392_v16 }
 0x1e1   :  { %2490 = vmatpush1.bf16.msra.mxu0 %v3390_v21  ;;  %v2549_v21 = vrot.slane %v2540_v20, %v3648_v63  ;;  %v2563_v63 = vstv %s3686_s6 }
 0x1e2   :  { %2491 = vmatprep.subr.bf16.mxu0 %v3395_v22 }
 0x1e5   :  { %2492 = vmatpush1.bf16.msra.mxu0 %v3393_v25 }
 0x1e6   :  { %2493 = vmatprep.subr.bf16.mxu0 %v3398_v32 }
 0x1e9   :  { %2494 = vmatpush1.bf16.msra.mxu0 %v3396_v33 }
 0x1ea   :  { %2495 = vmatprep.subr.bf16.mxu0 %v3401_v9 }
 0x1ed   :  { %2496 = vmatpush1.bf16.msra.mxu0 %v3399_v34 }
 0x1ee   :  { %2497 = vmatprep.subr.bf16.mxu0 %v3404_v35 }
 0x1f1   :  { %2498 = vmatpush1.bf16.msra.mxu0 %v3402_v38 }
 0x1f2   :  { %2499 = vmatprep.subr.bf16.mxu0 %v3407_v36 }
 0x1f5   :  { %2500 = vmatpush1.bf16.msra.mxu0 %v3405_v55 }
 0x1f6   :  { %2501 = vmatprep.subr.bf16.mxu0 %v3410_v37 }
 0x1f9   :  { %2502 = vmatpush1.bf16.msra.mxu0 %v3408_v39 }
 0x1fa   :  { %2503 = vmatprep.subr.bf16.mxu0 %v3413_v40 }
 0x1fd   :  { %2504 = vmatpush1.bf16.msra.mxu0 %v3411_v41 }
 0x1fe   :  { %2505 = vmatprep.subr.bf16.mxu0 %v3416_v42 }
 0x201   :  { %2506 = vmatpush1.bf16.msra.mxu0 %v3414_v43 }
 0x202   :  { %2507 = vmatprep.subr.bf16.mxu0 %v3419_v44 }
 0x205   :  { %2508 = vmatpush1.bf16.msra.mxu0 %v3417_v45 }
 0x206   :  { %2509 = vmatprep.subr.bf16.mxu0 %v3422_v46 }
 0x209   :  { %2510 = vmatpush1.bf16.msra.mxu0 %v3420_v47 }
 0x20a   :  { %2511 = vmatprep.subr.bf16.mxu0 %v3425_v48 }
 0x20d   :  { %2512 = vmatpush1.bf16.msra.mxu0 %v3423_v49 }
 0x20e   :  { %2513 = vmatprep.subr.bf16.mxu0 %v3428_v50 }
 0x211   :  { %2514 = vmatpush1.bf16.msra.mxu0 %v3426_v51 }
 0x212   :  { %2515 = vmatprep.subr.bf16.mxu0 %v3431_v52 }
 0x215   :  { %2516 = vmatpush1.bf16.msra.mxu0 %v3429_v53 }
 0x24b   :  { %v2009_v59 = vpop.f32.mrb[4].mxu1 }
 0x24c   :  { %v2911_v0 = vadd.f32 %v2009_v59, %v345_v57  ;;  %v2011_v26 = vpop.f32.mrb[5].mxu1 }
 0x24d   :  { %v2912_v1 = vadd.f32 %v2011_v26, %v349_v58  ;;  %v2013_v2 = vpop.f32.mrb[6].mxu1 }
 0x24e   :  { %v2028_v3 = vmul.f32 0.2, %v2911_v0  ;;  %v2913_v4 = vadd.f32 %v2013_v2, %v345_v57  ;;  %v2015_v5 = vpop.f32.mrb[7].mxu1  ;;  %vm2020_vm4 = vcmp.gt.f32.partialorder %v2911_v0, 0.0 }
 0x24f   :  { %v2029_v6 = vmul.f32 0.2, %v2912_v1  ;;  %v2914_v7 = vadd.f32 %v2015_v5, %v349_v58  ;;  %vm2021_vm5 = vcmp.gt.f32.partialorder %v2912_v1, 0.0 }
 0x250   :  { %vm2024_vm6 = vcmp.gt.f32.partialorder %v2913_v4, 0.0  ;;  %v2032_v10 = vmul.f32 0.2, %v2913_v4  ;;  %v2036_v11 = vsel %vm2020_vm4, %v2911_v0, %v2028_v3 }
 0x251   :  { %vm2025_vm7 = vcmp.gt.f32.partialorder %v2914_v7, 0.0  ;;  %v2033_v60 = vmul.f32 0.2, %v2914_v7  ;;  %v2037_v62 = vsel %vm2021_vm5, %v2912_v1, %v2029_v6 }
 0x252   :  { %v2040_v12 = vsel %vm2024_vm6, %v2913_v4, %v2032_v10 }
 0x253   :  { %v2044_v13 = vpack.c.bf16 %v2040_v12, %v2036_v11  ;;  %v2041_v14 = vsel %vm2025_vm7, %v2914_v7, %v2033_v60 }
 0x254   :  { %v2045_v15 = vpack.c.bf16 %v2041_v14, %v2037_v62 }
 0x256   :  { %2517 = vmatprep.mubr.bf16.mxu0 %v2045_v15 }
 0x257   :  { %2518 = vmatmul.mubr.bf16.vlgmr.msra.gmra.mrb[4].mxu0 %v2044_v13 }
 0x32a   :  { %v2519_v23 = vpop.f32.mrb[4].mxu0 }
 0x32b   :  { %v2915_v24 = vadd.f32 %v2519_v23, %v2115_v18  ;;  %v2521_v27 = vpop.f32.mrb[5].mxu0 }
 0x32c   :  { %v2916_v28 = vadd.f32 %v2521_v27, %v2119_v19  ;;  %v2523_v29 = vpop.f32.mrb[6].mxu0 }
 0x32d   :  { %vm2528_vm8 = vcmp.gt.f32.partialorder %v2915_v24, 0.0  ;;  %v2532_v30 = vmul.f32 0.2, %v2915_v24  ;;  %v2917_v31 = vadd.f32 %v2523_v29, %v2115_v18  ;;  %v2525_v16 = vpop.f32.mrb[7].mxu0 }
 0x32e   :  { %vm2529_vm9 = vcmp.gt.f32.partialorder %v2916_v28, 0.0  ;;  %v2533_v22 = vmul.f32 0.2, %v2916_v28  ;;  %v2918_v25 = vadd.f32 %v2525_v16, %v2119_v19 }
 0x32f   :  { %vm2530_vm10 = vcmp.gt.f32.partialorder %v2917_v31, 0.0  ;;  %v2534_v32 = vmul.f32 0.2, %v2917_v31  ;;  %v2536_v33 = vsel %vm2528_vm8, %v2915_v24, %v2532_v30 }
 0x330   :  { %vm2531_vm11 = vcmp.gt.f32.partialorder %v2918_v25, 0.0  ;;  %v2535_v9 = vmul.f32 0.2, %v2918_v25  ;;  %v2537_v34 = vsel %vm2529_vm9, %v2916_v28, %v2533_v22  ;;  %v2552_v35 = vmul.f32 %v2545_v8, %v2536_v33 }
 0x331   :  { %v2553_v38 = vmul.f32 %v2549_v21, %v2537_v34  ;;  %v2538_v36 = vsel %vm2530_vm10, %v2917_v31, %v2534_v32 }
 0x332   :  { %v2539_v55 = vsel %vm2531_vm11, %v2918_v25, %v2535_v9  ;;  %v2554_v61 = vmul.f32 %v2545_v8, %v2538_v36 }
 0x333   :  { %v2556_v37 = vadd.f32 %v2553_v38, %v2552_v35  ;;  %v2555_v39 = vmul.f32 %v2549_v21, %v2539_v55 }
 0x335   :  { %2557 = vadd.xlane.f32.xlu0 %v2556_v37  ;;  %v2559_v40 = vadd.f32 %v2555_v39, %v2554_v61 }
 0x339   :  { %2560 = vadd.xlane.f32.xlu0 %v2559_v40 }
 0x3c2   :  { %v2558_v41 = vpop.xlane.xlu0 %2557 }
 0x3c3   :  { %v2564_v42 = vadd.f32 %v2563_v63, %v2558_v41 }
 0x3c5   :  { %2567 = vst.msk [vmem:[%s3687_s7] sm:$0xff] %vm2566_vm12, %v2564_v42 }
 0x3c6   :  { %v2561_v43 = vpop.xlane.xlu0 %2560 }
 0x3c7   :  { %v2565_v44 = vadd.f32 %v2563_v63, %v2561_v43 }
 0x3c9   :  { %2568 = vst.msk [vmem:[%s3687_s7 + $0x8] sm:$0xff] %vm2566_vm12, %v2565_v44 }
 0x3ca   :  { %2573 = vsyncpa [#allocation4], 1 }
 0x3cb   :  { %2574 = vsyncpa [#allocation6], 1 }

</bundles_post_ra>
